<compile_context>
chip_gen: v7x
topology: tpu7x:2x2x1
jax: 0.10.0
libtpu: 0.0.40
codegen_flags: <defaults>
</compile_context>

<pallas_src>
import functools

import jax
import jax.numpy as jnp
from jax.experimental import pallas as pl
from jax.experimental.pallas import tpu as pltpu


def _rnn_kernel(x0_ref, w_ih_ref, w_hh_ref, b_ref, w_lin_ref, b_lin_ref,
                out_ref, *, n_tsteps, n_layers, batch):
    # TODO(synk): inter-layer dropout of nn.RNN (training mode) omitted; eval semantics.
    inp = x0_ref[...]                               # (B, Hp): input of timestep 0 = x[:, 0, :]
    ys = []

    for t in range(n_tsteps):
        cur = inp
        for l in range(n_layers):
            w_ih = w_ih_ref[t, l]                   # (Hp, Hp), pre-transposed -> cur @ w_ih
            w_hh = w_hh_ref[t, l]                   # (Hp, Hp), pre-transposed -> h @ w_hh
            # Hoisted input projection with folded biases (one batched matmul,
            # off the serial dependence chain).
            pre = (jnp.dot(cur, w_ih, preferred_element_type=jnp.float32)
                   + b_ref[t, l])                   # (B, Hp); b = b_ih + b_hh, (1, Hp) broadcast
            h = jnp.zeros_like(pre[0:1, :])         # (1, Hp)
            rows = []
            for i in range(batch):                  # Elman recurrence over the batch axis
                h = jnp.tanh(pre[i:i + 1, :]
                             + jnp.dot(h, w_hh, preferred_element_type=jnp.float32))
                rows.append(h)
            cur = jnp.concatenate(rows, axis=0)     # (B, Hp), stays in vregs

        # Linear readout: out[:, t] = rnn_out @ W_lin^T + b_lin
        y = (jnp.dot(cur, w_lin_ref[t], preferred_element_type=jnp.float32)
             + b_lin_ref[t])                        # (B, Hp)
        ys.append(y)
        inp = y                                     # next timestep's RNN input

    # One lane/sublane-dense store for the whole output (T*B rows, Hp lanes).
    out_ref[...] = jnp.concatenate(ys, axis=0)      # (T*B, Hp)


def rnn_forward(x, params, *, n_tsteps, n_layers):
    B, _, H = x.shape
    Hp = max(128, ((H + 127) // 128) * 128)         # lane-dense feature dim
    pad = Hp - H

    def pad_last(a, ndims):
        cfg = [(0, 0)] * (a.ndim - ndims) + [(0, pad)] * ndims
        return jnp.pad(a, cfg)

    # PyTorch stores weights as (out, in) and computes x @ W^T; pre-transpose + zero-pad (glue).
    x0 = pad_last(x[:, 0, :].astype(jnp.float32), 1)                     # (B, Hp)
    w_ih = pad_last(jnp.transpose(params["w_ih"], (0, 1, 3, 2)), 2)      # (T, L, Hp, Hp)
    w_hh = pad_last(jnp.transpose(params["w_hh"], (0, 1, 3, 2)), 2)      # (T, L, Hp, Hp)
    b = pad_last(params["b_ih"] + params["b_hh"], 1)[:, :, None, :]      # (T, L, 1, Hp)
    w_lin = pad_last(jnp.transpose(params["w_lin"], (0, 2, 1)), 2)       # (T, Hp, Hp)
    b_lin = pad_last(params["b_lin"], 1)[:, None, :]                     # (T, 1, Hp)

    kernel = functools.partial(_rnn_kernel, n_tsteps=n_tsteps,
                               n_layers=n_layers, batch=B)
    vmem = lambda: pl.BlockSpec(memory_space=pltpu.MemorySpace.VMEM)
    out = pl.pallas_call(
        kernel,
        out_shape=jax.ShapeDtypeStruct((n_tsteps * B, Hp), jnp.float32),
        in_specs=[vmem() for _ in range(6)],
        out_specs=vmem(),
    )(x0, w_ih, w_hh, b, w_lin, b_lin)
    # (T*B, Hp) -> (T, B, Hp) -> (B, T, H), like the torch `out`
    out = out.reshape(n_tsteps, B, Hp)
    return jnp.transpose(out, (1, 0, 2))[:, :, :H]


def rnn_forward_ref(x, params, *, n_tsteps, n_layers):
    """Pure-JAX reference mirroring the PyTorch forward (eval mode)."""
    B, _, H = x.shape
    inp = x[:, 0, :].astype(jnp.float32)
    outs = []
    for t in range(n_tsteps):
        cur = inp
        for l in range(n_layers):
            h = jnp.zeros((H,), jnp.float32)
            seq = []
            for i in range(B):
                h = jnp.tanh(params["w_ih"][t, l] @ cur[i] + params["b_ih"][t, l]
                             + params["w_hh"][t, l] @ h + params["b_hh"][t, l])
                seq.append(h)
            cur = jnp.stack(seq, 0)
        y = cur @ params["w_lin"][t].T + params["b_lin"][t]
        outs.append(y)
        inp = y
    return jnp.stack(outs, 1)


def init_params(key, n_neurons, n_layers, n_tsteps):
    H, L, T = n_neurons, n_layers, n_tsteps
    bound = 1.0 / (H ** 0.5)
    ks = jax.random.split(key, 6)
    u = lambda k, shape: jax.random.uniform(k, shape, jnp.float32, -bound, bound)
    return {
        "w_ih": u(ks[0], (T, L, H, H)),
        "w_hh": u(ks[1], (T, L, H, H)),
        "b_ih": u(ks[2], (T, L, H)),
        "b_hh": u(ks[3], (T, L, H)),
        "w_lin": u(ks[4], (T, H, H)),
        "b_lin": u(ks[5], (T, H)),
    }


if __name__ == "__main__":
    B, S, H = 4, 3, 32          # batch, seq (only t=0 used), n_neurons
    n_layers, n_tsteps = 2, 2

    key = jax.random.PRNGKey(0)
    k_param, k_x = jax.random.split(key)
    params = init_params(k_param, H, n_layers, n_tsteps)
    x = jax.random.normal(k_x, (B, S, H), jnp.float32)

    out = rnn_forward(x, params, n_tsteps=n_tsteps, n_layers=n_layers)
    out = jax.block_until_ready(out)

    ref = rnn_forward_ref(x, params, n_tsteps=n_tsteps, n_layers=n_layers)
    assert out.shape == (B, n_tsteps, H), out.shape
    assert out.dtype == jnp.float32
    assert jnp.allclose(out, ref, atol=1e-5, rtol=1e-5), float(jnp.max(jnp.abs(out - ref)))
    print("KERNEL_OK")
</pallas_src>

<mosaic_0001>
module attributes {stable_mosaic.version = 11 : i64} {
  func.func @_rnn_kernel(%arg0: memref<4x128xf32, #tpu.memory_space<vmem>>, %arg1: memref<2x2x128x128xf32, #tpu.memory_space<vmem>>, %arg2: memref<2x2x128x128xf32, #tpu.memory_space<vmem>>, %arg3: memref<2x2x1x128xf32, #tpu.memory_space<vmem>>, %arg4: memref<2x128x128xf32, #tpu.memory_space<vmem>>, %arg5: memref<2x1x128xf32, #tpu.memory_space<vmem>>, %arg6: memref<8x128xf32, #tpu.memory_space<vmem>>) attributes {dimension_semantics = [], scalar_prefetch = 0 : i64, scratch_operands = 0 : i64, tpu.core_type = #tpu.core_type<tc>} {
    %c0 = arith.constant 0 : index
    %c0_0 = arith.constant 0 : index
    %0 = vector.load %arg0[%c0, %c0_0] : memref<4x128xf32, #tpu.memory_space<vmem>>, vector<4x128xf32>
    %c0_1 = arith.constant 0 : index
    %c0_2 = arith.constant 0 : index
    %c0_3 = arith.constant 0 : index
    %c0_4 = arith.constant 0 : index
    %1 = vector.load %arg1[%c0_1, %c0_2, %c0_3, %c0_4] : memref<2x2x128x128xf32, #tpu.memory_space<vmem>>, vector<1x1x128x128xf32>
    %2 = vector.shape_cast %1 : vector<1x1x128x128xf32> to vector<128x128xf32>
    %c0_5 = arith.constant 0 : index
    %c0_6 = arith.constant 0 : index
    %c0_7 = arith.constant 0 : index
    %c0_8 = arith.constant 0 : index
    %3 = vector.load %arg2[%c0_5, %c0_6, %c0_7, %c0_8] : memref<2x2x128x128xf32, #tpu.memory_space<vmem>>, vector<1x1x128x128xf32>
    %4 = vector.shape_cast %3 : vector<1x1x128x128xf32> to vector<128x128xf32>
    %cst = arith.constant dense<0.000000e+00> : vector<4x128xf32>
    %5 = tpu.matmul %0, %2, %cst {dimension_numbers = #tpu.dot_dimension_numbers<[1], [0], [0], [1], [0, 0, 1, 1], [], []>} : vector<4x128xf32>, vector<128x128xf32>, vector<4x128xf32> -> vector<4x128xf32>
    %c0_9 = arith.constant 0 : index
    %c0_10 = arith.constant 0 : index
    %c0_11 = arith.constant 0 : index
    %c0_12 = arith.constant 0 : index
    %6 = vector.load %arg3[%c0_9, %c0_10, %c0_11, %c0_12] : memref<2x2x1x128xf32, #tpu.memory_space<vmem>>, vector<1x1x1x128xf32>
    %7 = vector.shape_cast %6 : vector<1x1x1x128xf32> to vector<1x128xf32>
    %8 = vector.broadcast %7 : vector<1x128xf32> to vector<4x128xf32>
    %9 = arith.addf %5, %8 : vector<4x128xf32>
    %cst_13 = arith.constant 0.000000e+00 : f32
    %10 = vector.broadcast %cst_13 : f32 to vector<1x128xf32>
    %11 = vector.extract_strided_slice %9 {offsets = [0, 0], sizes = [1, 128], strides = [1, 1]} : vector<4x128xf32> to vector<1x128xf32>
    %cst_14 = arith.constant dense<0.000000e+00> : vector<1x128xf32>
    %12 = tpu.matmul %10, %4, %cst_14 {dimension_numbers = #tpu.dot_dimension_numbers<[1], [0], [0], [1], [0, 0, 1, 1], [], []>} : vector<1x128xf32>, vector<128x128xf32>, vector<1x128xf32> -> vector<1x128xf32>
    %13 = arith.addf %11, %12 : vector<1x128xf32>
    %14 = math.tanh %13 : vector<1x128xf32>
    %15 = vector.extract_strided_slice %9 {offsets = [1, 0], sizes = [1, 128], strides = [1, 1]} : vector<4x128xf32> to vector<1x128xf32>
    %cst_15 = arith.constant dense<0.000000e+00> : vector<1x128xf32>
    %16 = tpu.matmul %14, %4, %cst_15 {dimension_numbers = #tpu.dot_dimension_numbers<[1], [0], [0], [1], [0, 0, 1, 1], [], []>} : vector<1x128xf32>, vector<128x128xf32>, vector<1x128xf32> -> vector<1x128xf32>
    %17 = arith.addf %15, %16 : vector<1x128xf32>
    %18 = math.tanh %17 : vector<1x128xf32>
    %19 = vector.extract_strided_slice %9 {offsets = [2, 0], sizes = [1, 128], strides = [1, 1]} : vector<4x128xf32> to vector<1x128xf32>
    %cst_16 = arith.constant dense<0.000000e+00> : vector<1x128xf32>
    %20 = tpu.matmul %18, %4, %cst_16 {dimension_numbers = #tpu.dot_dimension_numbers<[1], [0], [0], [1], [0, 0, 1, 1], [], []>} : vector<1x128xf32>, vector<128x128xf32>, vector<1x128xf32> -> vector<1x128xf32>
    %21 = arith.addf %19, %20 : vector<1x128xf32>
    %22 = math.tanh %21 : vector<1x128xf32>
    %23 = vector.extract_strided_slice %9 {offsets = [3, 0], sizes = [1, 128], strides = [1, 1]} : vector<4x128xf32> to vector<1x128xf32>
    %cst_17 = arith.constant dense<0.000000e+00> : vector<1x128xf32>
    %24 = tpu.matmul %22, %4, %cst_17 {dimension_numbers = #tpu.dot_dimension_numbers<[1], [0], [0], [1], [0, 0, 1, 1], [], []>} : vector<1x128xf32>, vector<128x128xf32>, vector<1x128xf32> -> vector<1x128xf32>
    %25 = arith.addf %23, %24 : vector<1x128xf32>
    %26 = math.tanh %25 : vector<1x128xf32>
    %27 = tpu.concatenate %14, %18, %22, %26 in 0 : vector<1x128xf32>, vector<1x128xf32>, vector<1x128xf32>, vector<1x128xf32> -> vector<4x128xf32>
    %c0_18 = arith.constant 0 : index
    %c1 = arith.constant 1 : index
    %c0_19 = arith.constant 0 : index
    %c0_20 = arith.constant 0 : index
    %28 = vector.load %arg1[%c0_18, %c1, %c0_19, %c0_20] : memref<2x2x128x128xf32, #tpu.memory_space<vmem>>, vector<1x1x128x128xf32>
    %29 = vector.shape_cast %28 : vector<1x1x128x128xf32> to vector<128x128xf32>
    %c0_21 = arith.constant 0 : index
    %c1_22 = arith.constant 1 : index
    %c0_23 = arith.constant 0 : index
    %c0_24 = arith.constant 0 : index
    %30 = vector.load %arg2[%c0_21, %c1_22, %c0_23, %c0_24] : memref<2x2x128x128xf32, #tpu.memory_space<vmem>>, vector<1x1x128x128xf32>
    %31 = vector.shape_cast %30 : vector<1x1x128x128xf32> to vector<128x128xf32>
    %cst_25 = arith.constant dense<0.000000e+00> : vector<4x128xf32>
    %32 = tpu.matmul %27, %29, %cst_25 {dimension_numbers = #tpu.dot_dimension_numbers<[1], [0], [0], [1], [0, 0, 1, 1], [], []>} : vector<4x128xf32>, vector<128x128xf32>, vector<4x128xf32> -> vector<4x128xf32>
    %c0_26 = arith.constant 0 : index
    %c1_27 = arith.constant 1 : index
    %c0_28 = arith.constant 0 : index
    %c0_29 = arith.constant 0 : index
    %33 = vector.load %arg3[%c0_26, %c1_27, %c0_28, %c0_29] : memref<2x2x1x128xf32, #tpu.memory_space<vmem>>, vector<1x1x1x128xf32>
    %34 = vector.shape_cast %33 : vector<1x1x1x128xf32> to vector<1x128xf32>
    %35 = vector.broadcast %34 : vector<1x128xf32> to vector<4x128xf32>
    %36 = arith.addf %32, %35 : vector<4x128xf32>
    %cst_30 = arith.constant 0.000000e+00 : f32
    %37 = vector.broadcast %cst_30 : f32 to vector<1x128xf32>
    %38 = vector.extract_strided_slice %36 {offsets = [0, 0], sizes = [1, 128], strides = [1, 1]} : vector<4x128xf32> to vector<1x128xf32>
    %cst_31 = arith.constant dense<0.000000e+00> : vector<1x128xf32>
    %39 = tpu.matmul %37, %31, %cst_31 {dimension_numbers = #tpu.dot_dimension_numbers<[1], [0], [0], [1], [0, 0, 1, 1], [], []>} : vector<1x128xf32>, vector<128x128xf32>, vector<1x128xf32> -> vector<1x128xf32>
    %40 = arith.addf %38, %39 : vector<1x128xf32>
    %41 = math.tanh %40 : vector<1x128xf32>
    %42 = vector.extract_strided_slice %36 {offsets = [1, 0], sizes = [1, 128], strides = [1, 1]} : vector<4x128xf32> to vector<1x128xf32>
    %cst_32 = arith.constant dense<0.000000e+00> : vector<1x128xf32>
    %43 = tpu.matmul %41, %31, %cst_32 {dimension_numbers = #tpu.dot_dimension_numbers<[1], [0], [0], [1], [0, 0, 1, 1], [], []>} : vector<1x128xf32>, vector<128x128xf32>, vector<1x128xf32> -> vector<1x128xf32>
    %44 = arith.addf %42, %43 : vector<1x128xf32>
    %45 = math.tanh %44 : vector<1x128xf32>
    %46 = vector.extract_strided_slice %36 {offsets = [2, 0], sizes = [1, 128], strides = [1, 1]} : vector<4x128xf32> to vector<1x128xf32>
    %cst_33 = arith.constant dense<0.000000e+00> : vector<1x128xf32>
    %47 = tpu.matmul %45, %31, %cst_33 {dimension_numbers = #tpu.dot_dimension_numbers<[1], [0], [0], [1], [0, 0, 1, 1], [], []>} : vector<1x128xf32>, vector<128x128xf32>, vector<1x128xf32> -> vector<1x128xf32>
    %48 = arith.addf %46, %47 : vector<1x128xf32>
    %49 = math.tanh %48 : vector<1x128xf32>
    %50 = vector.extract_strided_slice %36 {offsets = [3, 0], sizes = [1, 128], strides = [1, 1]} : vector<4x128xf32> to vector<1x128xf32>
    %cst_34 = arith.constant dense<0.000000e+00> : vector<1x128xf32>
    %51 = tpu.matmul %49, %31, %cst_34 {dimension_numbers = #tpu.dot_dimension_numbers<[1], [0], [0], [1], [0, 0, 1, 1], [], []>} : vector<1x128xf32>, vector<128x128xf32>, vector<1x128xf32> -> vector<1x128xf32>
    %52 = arith.addf %50, %51 : vector<1x128xf32>
    %53 = math.tanh %52 : vector<1x128xf32>
    %54 = tpu.concatenate %41, %45, %49, %53 in 0 : vector<1x128xf32>, vector<1x128xf32>, vector<1x128xf32>, vector<1x128xf32> -> vector<4x128xf32>
    %c0_35 = arith.constant 0 : index
    %c0_36 = arith.constant 0 : index
    %c0_37 = arith.constant 0 : index
    %55 = vector.load %arg4[%c0_35, %c0_36, %c0_37] : memref<2x128x128xf32, #tpu.memory_space<vmem>>, vector<1x128x128xf32>
    %56 = vector.shape_cast %55 : vector<1x128x128xf32> to vector<128x128xf32>
    %cst_38 = arith.constant dense<0.000000e+00> : vector<4x128xf32>
    %57 = tpu.matmul %54, %56, %cst_38 {dimension_numbers = #tpu.dot_dimension_numbers<[1], [0], [0], [1], [0, 0, 1, 1], [], []>} : vector<4x128xf32>, vector<128x128xf32>, vector<4x128xf32> -> vector<4x128xf32>
    %c0_39 = arith.constant 0 : index
    %c0_40 = arith.constant 0 : index
    %c0_41 = arith.constant 0 : index
    %58 = vector.load %arg5[%c0_39, %c0_40, %c0_41] : memref<2x1x128xf32, #tpu.memory_space<vmem>>, vector<1x1x128xf32>
    %59 = vector.shape_cast %58 : vector<1x1x128xf32> to vector<1x128xf32>
    %60 = vector.broadcast %59 : vector<1x128xf32> to vector<4x128xf32>
    %61 = arith.addf %57, %60 : vector<4x128xf32>
    %c1_42 = arith.constant 1 : index
    %c0_43 = arith.constant 0 : index
    %c0_44 = arith.constant 0 : index
    %c0_45 = arith.constant 0 : index
    %62 = vector.load %arg1[%c1_42, %c0_43, %c0_44, %c0_45] : memref<2x2x128x128xf32, #tpu.memory_space<vmem>>, vector<1x1x128x128xf32>
    %63 = vector.shape_cast %62 : vector<1x1x128x128xf32> to vector<128x128xf32>
    %c1_46 = arith.constant 1 : index
    %c0_47 = arith.constant 0 : index
    %c0_48 = arith.constant 0 : index
    %c0_49 = arith.constant 0 : index
    %64 = vector.load %arg2[%c1_46, %c0_47, %c0_48, %c0_49] : memref<2x2x128x128xf32, #tpu.memory_space<vmem>>, vector<1x1x128x128xf32>
    %65 = vector.shape_cast %64 : vector<1x1x128x128xf32> to vector<128x128xf32>
    %cst_50 = arith.constant dense<0.000000e+00> : vector<4x128xf32>
    %66 = tpu.matmul %61, %63, %cst_50 {dimension_numbers = #tpu.dot_dimension_numbers<[1], [0], [0], [1], [0, 0, 1, 1], [], []>} : vector<4x128xf32>, vector<128x128xf32>, vector<4x128xf32> -> vector<4x128xf32>
    %c1_51 = arith.constant 1 : index
    %c0_52 = arith.constant 0 : index
    %c0_53 = arith.constant 0 : index
    %c0_54 = arith.constant 0 : index
    %67 = vector.load %arg3[%c1_51, %c0_52, %c0_53, %c0_54] : memref<2x2x1x128xf32, #tpu.memory_space<vmem>>, vector<1x1x1x128xf32>
    %68 = vector.shape_cast %67 : vector<1x1x1x128xf32> to vector<1x128xf32>
    %69 = vector.broadcast %68 : vector<1x128xf32> to vector<4x128xf32>
    %70 = arith.addf %66, %69 : vector<4x128xf32>
    %cst_55 = arith.constant 0.000000e+00 : f32
    %71 = vector.broadcast %cst_55 : f32 to vector<1x128xf32>
    %72 = vector.extract_strided_slice %70 {offsets = [0, 0], sizes = [1, 128], strides = [1, 1]} : vector<4x128xf32> to vector<1x128xf32>
    %cst_56 = arith.constant dense<0.000000e+00> : vector<1x128xf32>
    %73 = tpu.matmul %71, %65, %cst_56 {dimension_numbers = #tpu.dot_dimension_numbers<[1], [0], [0], [1], [0, 0, 1, 1], [], []>} : vector<1x128xf32>, vector<128x128xf32>, vector<1x128xf32> -> vector<1x128xf32>
    %74 = arith.addf %72, %73 : vector<1x128xf32>
    %75 = math.tanh %74 : vector<1x128xf32>
    %76 = vector.extract_strided_slice %70 {offsets = [1, 0], sizes = [1, 128], strides = [1, 1]} : vector<4x128xf32> to vector<1x128xf32>
    %cst_57 = arith.constant dense<0.000000e+00> : vector<1x128xf32>
    %77 = tpu.matmul %75, %65, %cst_57 {dimension_numbers = #tpu.dot_dimension_numbers<[1], [0], [0], [1], [0, 0, 1, 1], [], []>} : vector<1x128xf32>, vector<128x128xf32>, vector<1x128xf32> -> vector<1x128xf32>
    %78 = arith.addf %76, %77 : vector<1x128xf32>
    %79 = math.tanh %78 : vector<1x128xf32>
    %80 = vector.extract_strided_slice %70 {offsets = [2, 0], sizes = [1, 128], strides = [1, 1]} : vector<4x128xf32> to vector<1x128xf32>
    %cst_58 = arith.constant dense<0.000000e+00> : vector<1x128xf32>
    %81 = tpu.matmul %79, %65, %cst_58 {dimension_numbers = #tpu.dot_dimension_numbers<[1], [0], [0], [1], [0, 0, 1, 1], [], []>} : vector<1x128xf32>, vector<128x128xf32>, vector<1x128xf32> -> vector<1x128xf32>
    %82 = arith.addf %80, %81 : vector<1x128xf32>
    %83 = math.tanh %82 : vector<1x128xf32>
    %84 = vector.extract_strided_slice %70 {offsets = [3, 0], sizes = [1, 128], strides = [1, 1]} : vector<4x128xf32> to vector<1x128xf32>
    %cst_59 = arith.constant dense<0.000000e+00> : vector<1x128xf32>
    %85 = tpu.matmul %83, %65, %cst_59 {dimension_numbers = #tpu.dot_dimension_numbers<[1], [0], [0], [1], [0, 0, 1, 1], [], []>} : vector<1x128xf32>, vector<128x128xf32>, vector<1x128xf32> -> vector<1x128xf32>
    %86 = arith.addf %84, %85 : vector<1x128xf32>
    %87 = math.tanh %86 : vector<1x128xf32>
    %88 = tpu.concatenate %75, %79, %83, %87 in 0 : vector<1x128xf32>, vector<1x128xf32>, vector<1x128xf32>, vector<1x128xf32> -> vector<4x128xf32>
    %c1_60 = arith.constant 1 : index
    %c1_61 = arith.constant 1 : index
    %c0_62 = arith.constant 0 : index
    %c0_63 = arith.constant 0 : index
    %89 = vector.load %arg1[%c1_60, %c1_61, %c0_62, %c0_63] : memref<2x2x128x128xf32, #tpu.memory_space<vmem>>, vector<1x1x128x128xf32>
    %90 = vector.shape_cast %89 : vector<1x1x128x128xf32> to vector<128x128xf32>
    %c1_64 = arith.constant 1 : index
    %c1_65 = arith.constant 1 : index
    %c0_66 = arith.constant 0 : index
    %c0_67 = arith.constant 0 : index
    %91 = vector.load %arg2[%c1_64, %c1_65, %c0_66, %c0_67] : memref<2x2x128x128xf32, #tpu.memory_space<vmem>>, vector<1x1x128x128xf32>
    %92 = vector.shape_cast %91 : vector<1x1x128x128xf32> to vector<128x128xf32>
    %cst_68 = arith.constant dense<0.000000e+00> : vector<4x128xf32>
    %93 = tpu.matmul %88, %90, %cst_68 {dimension_numbers = #tpu.dot_dimension_numbers<[1], [0], [0], [1], [0, 0, 1, 1], [], []>} : vector<4x128xf32>, vector<128x128xf32>, vector<4x128xf32> -> vector<4x128xf32>
    %c1_69 = arith.constant 1 : index
    %c1_70 = arith.constant 1 : index
    %c0_71 = arith.constant 0 : index
    %c0_72 = arith.constant 0 : index
    %94 = vector.load %arg3[%c1_69, %c1_70, %c0_71, %c0_72] : memref<2x2x1x128xf32, #tpu.memory_space<vmem>>, vector<1x1x1x128xf32>
    %95 = vector.shape_cast %94 : vector<1x1x1x128xf32> to vector<1x128xf32>
    %96 = vector.broadcast %95 : vector<1x128xf32> to vector<4x128xf32>
    %97 = arith.addf %93, %96 : vector<4x128xf32>
    %cst_73 = arith.constant 0.000000e+00 : f32
    %98 = vector.broadcast %cst_73 : f32 to vector<1x128xf32>
    %99 = vector.extract_strided_slice %97 {offsets = [0, 0], sizes = [1, 128], strides = [1, 1]} : vector<4x128xf32> to vector<1x128xf32>
    %cst_74 = arith.constant dense<0.000000e+00> : vector<1x128xf32>
    %100 = tpu.matmul %98, %92, %cst_74 {dimension_numbers = #tpu.dot_dimension_numbers<[1], [0], [0], [1], [0, 0, 1, 1], [], []>} : vector<1x128xf32>, vector<128x128xf32>, vector<1x128xf32> -> vector<1x128xf32>
    %101 = arith.addf %99, %100 : vector<1x128xf32>
    %102 = math.tanh %101 : vector<1x128xf32>
    %103 = vector.extract_strided_slice %97 {offsets = [1, 0], sizes = [1, 128], strides = [1, 1]} : vector<4x128xf32> to vector<1x128xf32>
    %cst_75 = arith.constant dense<0.000000e+00> : vector<1x128xf32>
    %104 = tpu.matmul %102, %92, %cst_75 {dimension_numbers = #tpu.dot_dimension_numbers<[1], [0], [0], [1], [0, 0, 1, 1], [], []>} : vector<1x128xf32>, vector<128x128xf32>, vector<1x128xf32> -> vector<1x128xf32>
    %105 = arith.addf %103, %104 : vector<1x128xf32>
    %106 = math.tanh %105 : vector<1x128xf32>
    %107 = vector.extract_strided_slice %97 {offsets = [2, 0], sizes = [1, 128], strides = [1, 1]} : vector<4x128xf32> to vector<1x128xf32>
    %cst_76 = arith.constant dense<0.000000e+00> : vector<1x128xf32>
    %108 = tpu.matmul %106, %92, %cst_76 {dimension_numbers = #tpu.dot_dimension_numbers<[1], [0], [0], [1], [0, 0, 1, 1], [], []>} : vector<1x128xf32>, vector<128x128xf32>, vector<1x128xf32> -> vector<1x128xf32>
    %109 = arith.addf %107, %108 : vector<1x128xf32>
    %110 = math.tanh %109 : vector<1x128xf32>
    %111 = vector.extract_strided_slice %97 {offsets = [3, 0], sizes = [1, 128], strides = [1, 1]} : vector<4x128xf32> to vector<1x128xf32>
    %cst_77 = arith.constant dense<0.000000e+00> : vector<1x128xf32>
    %112 = tpu.matmul %110, %92, %cst_77 {dimension_numbers = #tpu.dot_dimension_numbers<[1], [0], [0], [1], [0, 0, 1, 1], [], []>} : vector<1x128xf32>, vector<128x128xf32>, vector<1x128xf32> -> vector<1x128xf32>
    %113 = arith.addf %111, %112 : vector<1x128xf32>
    %114 = math.tanh %113 : vector<1x128xf32>
    %115 = tpu.concatenate %102, %106, %110, %114 in 0 : vector<1x128xf32>, vector<1x128xf32>, vector<1x128xf32>, vector<1x128xf32> -> vector<4x128xf32>
    %c1_78 = arith.constant 1 : index
    %c0_79 = arith.constant 0 : index
    %c0_80 = arith.constant 0 : index
    %116 = vector.load %arg4[%c1_78, %c0_79, %c0_80] : memref<2x128x128xf32, #tpu.memory_space<vmem>>, vector<1x128x128xf32>
    %117 = vector.shape_cast %116 : vector<1x128x128xf32> to vector<128x128xf32>
    %cst_81 = arith.constant dense<0.000000e+00> : vector<4x128xf32>
    %118 = tpu.matmul %115, %117, %cst_81 {dimension_numbers = #tpu.dot_dimension_numbers<[1], [0], [0], [1], [0, 0, 1, 1], [], []>} : vector<4x128xf32>, vector<128x128xf32>, vector<4x128xf32> -> vector<4x128xf32>
    %c1_82 = arith.constant 1 : index
    %c0_83 = arith.constant 0 : index
    %c0_84 = arith.constant 0 : index
    %119 = vector.load %arg5[%c1_82, %c0_83, %c0_84] : memref<2x1x128xf32, #tpu.memory_space<vmem>>, vector<1x1x128xf32>
    %120 = vector.shape_cast %119 : vector<1x1x128xf32> to vector<1x128xf32>
    %121 = vector.broadcast %120 : vector<1x128xf32> to vector<4x128xf32>
    %122 = arith.addf %118, %121 : vector<4x128xf32>
    %123 = tpu.concatenate %61, %122 in 0 : vector<4x128xf32>, vector<4x128xf32> -> vector<8x128xf32>
    %c0_85 = arith.constant 0 : index
    %c0_86 = arith.constant 0 : index
    %124 = vector.load %arg6[%c0_85, %c0_86] : memref<8x128xf32, #tpu.memory_space<vmem>>, vector<8x128xf32>
    tpu.vector_store %arg6[%c0_85, %c0_86], %123 {strides = array<i32>} : memref<8x128xf32, #tpu.memory_space<vmem>>, vector<8x128xf32>,
    return
  }
}

</mosaic_0001>

<bundles_post_ra>
// kernel: tpu_custom_call.1
= control target key start
LH: loop header
LB: loop body
LE: loop exit
PB: predicated region body
PF: predicated region fallthrough
CT: control target
= control target key end

     0   :  { %11 = vsyncpa [#allocation3], 0  ;;  %s4400_s0 = inlined_call_operand.hbm [shape: f32[4,128], index: 0, kind: input, shape index: {}]   ;;  %s4401_s1 = inlined_call_operand.hbm [shape: f32[2,2,128,128], index: 1, kind: input, shape index: {}]   ;;  %s4402_s2 = inlined_call_operand.hbm [shape: f32[2,2,128,128], index: 2, kind: input, shape index: {}]   ;;  %s4403_s3 = inlined_call_operand.vmem [shape: f32[2,2,1,128], index: 3, kind: input, shape index: {}]   ;;  %s4404_s4 = inlined_call_operand.hbm [shape: f32[2,128,128], index: 4, kind: input, shape index: {}]   ;;  %s4405_s5 = inlined_call_operand.vmem [shape: f32[2,1,128], index: 5, kind: input, shape index: {}]   ;;  %s4406_s6 = inlined_call_operand.hbm [shape: f32[8,128], index: 6, kind: output, shape index: {}]  }
   0x1   :  { %12 = vsyncpa [#allocation6], 0 }
   0x2   :  { %13 = vsyncpa [#allocation9], 0 }
   0x3   :  { %14 = vsyncpa [#allocation4], 0  ;;  %s3803_s21 = smov [#allocation5]   ;;  %s3685_s25 = scalar_lea.hbm %s4401_s1, 8192 }
   0x4   :  { %s30_s22 = sshll.u32 %s3803_s21, 4  ;;  %p3686_p0 = scmp.ne.s32.totalorder %s4401_s1, %s3685_s25  ;;  %s31_s22 = int_to_ptr.vmem [resolvable:$true] %s30_s22 }
   0x5   :  { %p3689_p1 = scmp.lt.u32.totalorder %s3685_s25, %s4401_s1 }
   0x7   :  { %p3691_p2 = pnand %p3689_p1, %p3686_p0 }
   0x9   :  { %3694 = shalt.err (!%p3691_p2)
}
   0xa   :  { %s3695_s30 = scalar_lea.vmem %s31_s22, 8192  ;;  %p3700_p4 = scmp.lt.s32.totalorder %s31_s22, %s31_s22 }
   0xb   :  { %p3696_p3 = scmp.ne.s32.totalorder %s31_s22, %s3695_s30  ;;  %p3701_p5 = scmp.lt.s32.totalorder %s3695_s30, %s3695_s30 }
   0xd   :  { %p3702_p6 = por %p3701_p5, %p3700_p4 }
   0xf   :  { %p3703_p7 = pnand %p3702_p6, %p3696_p3 }
  0x11   :  { %3706 = shalt.err (!%p3703_p7)
}
  0x12   :  { %s3804_s7 = smov 128   ;;  %s3805_s8 = smov 8  }
  0x13   :  { %36 = dma.hbm_to_vmem [thread:$0]  %s4401_s1, 8192, %s31_s22, [#allocation6], %s3804_s7, %s3804_s7, %s3805_s8  }
  0x14   :  { %s3806_s11 = smov [#allocation2]   ;;  %s3807_s13 = smov [#allocation7]  }
  0x15   :  { %s21_s12 = sshll.u32 %s3806_s11, 4  ;;  %s42_s14 = sshll.u32 %s3807_s13, 4  ;;  %s22_s12 = int_to_ptr.vmem [resolvable:$true] %s21_s12  ;;  %s43_s14 = int_to_ptr.vmem [resolvable:$true] %s42_s14 }
  0x16   :  { %s3707_s17 = scalar_lea.hbm %s4400_s0, 64 }
  0x17   :  { %p3708_p8 = scmp.ne.s32.totalorder %s4400_s0, %s3707_s17  ;;  %p3711_p9 = scmp.lt.u32.totalorder %s3707_s17, %s4400_s0 }
  0x19   :  { %p3713_p10 = pnand %p3711_p9, %p3708_p8 }
  0x1b   :  { %3716 = shalt.err (!%p3713_p10)
}
  0x1c   :  { %s3717_s1 = scalar_lea.vmem %s22_s12, 64  ;;  %p3722_p12 = scmp.lt.s32.totalorder %s22_s12, %s22_s12 }
  0x1d   :  { %p3718_p11 = scmp.ne.s32.totalorder %s22_s12, %s3717_s1  ;;  %p3723_p13 = scmp.lt.s32.totalorder %s3717_s1, %s3717_s1 }
  0x1f   :  { %p3724_p0 = por %p3723_p13, %p3722_p12 }
  0x21   :  { %p3725_p1 = pnand %p3724_p0, %p3718_p11 }
  0x23   :  { %3728 = shalt.err (!%p3725_p1)
}
  0x24   :  { %24 = dma.hbm_to_vmem [thread:$0]  %s4400_s0, 64, %s22_s12, [#allocation3]  }
  0x25   :  { %s3729_s26 = scalar_lea.hbm %s4402_s2, 8192 }
  0x26   :  { %p3730_p2 = scmp.ne.s32.totalorder %s4402_s2, %s3729_s26  ;;  %p3733_p3 = scmp.lt.u32.totalorder %s3729_s26, %s4402_s2 }
  0x28   :  { %p3735_p4 = pnand %p3733_p3, %p3730_p2 }
  0x2a   :  { %3738 = shalt.err (!%p3735_p4)
}
  0x2b   :  { %s3739_s9 = scalar_lea.vmem %s43_s14, 8192  ;;  %p3744_p6 = scmp.lt.s32.totalorder %s43_s14, %s43_s14 }
  0x2c   :  { %p3740_p5 = scmp.ne.s32.totalorder %s43_s14, %s3739_s9  ;;  %p3745_p7 = scmp.lt.s32.totalorder %s3739_s9, %s3739_s9 }
  0x2e   :  { %p3746_p8 = por %p3745_p7, %p3744_p6 }
  0x30   :  { %p3747_p9 = pnand %p3746_p8, %p3740_p5 }
  0x32   :  { %3750 = shalt.err (!%p3747_p9)
}
  0x33   :  { %48 = dma.hbm_to_vmem [thread:$0]  %s4402_s2, 8192, %s43_s14, [#allocation6], %s3804_s7, %s3804_s7, %s3805_s8  }
  0x34   :  { %s3808_s11 = smov [#allocation8]   ;;  %s3751_s16 = scalar_lea.hbm %s4404_s4, 4096 }
  0x35   :  { %s56_s12 = sshll.u32 %s3808_s11, 4  ;;  %p3752_p10 = scmp.ne.s32.totalorder %s4404_s4, %s3751_s16  ;;  %s57_s12 = int_to_ptr.vmem [resolvable:$true] %s56_s12 }
  0x36   :  { %p3755_p11 = scmp.lt.u32.totalorder %s3751_s16, %s4404_s4 }
  0x38   :  { %p3757_p12 = pnand %p3755_p11, %p3752_p10 }
  0x3a   :  { %3760 = shalt.err (!%p3757_p12)
}
  0x3b   :  { %s3761_s21 = scalar_lea.vmem %s57_s12, 4096  ;;  %p3766_p0 = scmp.lt.s32.totalorder %s57_s12, %s57_s12 }
  0x3c   :  { %p3762_p13 = scmp.ne.s32.totalorder %s57_s12, %s3761_s21  ;;  %p3767_p1 = scmp.lt.s32.totalorder %s3761_s21, %s3761_s21 }
  0x3e   :  { %p3768_p2 = por %p3767_p1, %p3766_p0 }
  0x40   :  { %p3769_p3 = pnand %p3768_p2, %p3762_p13 }
  0x42   :  { %3772 = shalt.err (!%p3769_p3)
}
  0x43   :  { %62 = dma.hbm_to_vmem [thread:$0]  %s4404_s4, 4096, %s57_s12, [#allocation9], %s3804_s7, %s3804_s7, %s3805_s8  }
  0x44   :  { %3795 = dma.done.wait [#allocation3], 64  }
  0x45   :  { %3796 = vsyncadd [#allocation3], 4294967232 }
  0x46   :  { %3797 = dma.done.wait [#allocation6], 16384  }
  0x47   :  { %3798 = vsyncadd [#allocation6], 4294950912 }
  0x48   :  { %3799 = dma.done.wait [#allocation9], 4096  }
  0x49   :  { %3800 = vsyncadd [#allocation9], 4294963200  ;;  %v3809_v0 = vmov 0.0|0.0   ;;  %vm3810_vm0 = vmmov 0   ;;  %v3811_v1 = vmov 0.0   ;;  %v78_v2 = vld [vmem:[#allocation5] sm:$0xff] }
  0x4a   :  { %3115 = vmatprep.subr.bf16.mxu0 %v3809_v0  ;;  %3139 = vmatprep.subr.bf16.mxu1 %v3809_v0  ;;  %v79_v3 = vld [vmem:[#allocation5 + $0x8] sm:$0xff]  ;;  %v94_v4 = vld [vmem:[#allocation7] sm:$0xff]  ;;  %v80_v7 = vld [vmem:[#allocation5 + $0x10] sm:$0xff]  ;;  %vm490_vm1 = vcmask 1040384   ;;  %vm492_vm2 = vcmask 1041408   ;;  %vm494_vm3 = vcmask 1042432  }
  0x4b   :  { %2377 = vmatprep.mubr.msk.f32.mxu0 %vm3810_vm0, %v3811_v1  ;;  %2412 = vmatprep.mubr.msk.f32.mxu1 %vm3810_vm0, %v3811_v1  ;;  %v3116_v5 = vpack.c.bf16 %v79_v3, %v78_v2  ;;  %v95_v6 = vld [vmem:[#allocation7 + $0x8] sm:$0xff]  ;;  %v81_v8 = vld [vmem:[#allocation5 + $0x18] sm:$0xff]  ;;  %v96_v10 = vld [vmem:[#allocation7 + $0x10] sm:$0xff]  ;;  %s3812_s29 = smov [#allocation10]   ;;  %vm1941_vm4 = vcmask 1043456  }
  0x4c   :  { %v3911_v9 = vpack.c.bf16 %v95_v6, %v94_v4  ;;  %v97_v11 = vld [vmem:[#allocation7 + $0x18] sm:$0xff]  ;;  %v3119_v12 = vpack.c.bf16 %v81_v8, %v80_v7  ;;  %v82_v14 = vld [vmem:[#allocation5 + $0x20] sm:$0xff]  ;;  %v83_v15 = vld [vmem:[#allocation5 + $0x28] sm:$0xff]  ;;  %s1950_s30 = sshll.u32 %s3812_s29, 4  ;;  %s1951_s30 = int_to_ptr.vmem [resolvable:$true] %s1950_s30 }
  0x4d   :  { %3117 = vmatpush3.bf16.msra.mxu0 %v3116_v5  ;;  %v3915_v13 = vpack.c.bf16 %v97_v11, %v96_v10  ;;  %v98_v16 = vld [vmem:[#allocation7 + $0x20] sm:$0xff]  ;;  %v99_v17 = vld [vmem:[#allocation7 + $0x28] sm:$0xff]  ;;  %v3122_v18 = vpack.c.bf16 %v83_v15, %v82_v14  ;;  %v84_v20 = vld [vmem:[#allocation5 + $0x30] sm:$0xff]  ;;  %s3773_s9 = scalar_lea.vmem %s1951_s30, 128  ;;  %p3778_p5 = scmp.lt.s32.totalorder %s1951_s30, %s1951_s30 }
  0x4e   :  { %3141 = vmatpush3.bf16.msra.mxu1 %v3911_v9  ;;  %3118 = vmatprep.subr.bf16.mxu0 %v3809_v0  ;;  %v3920_v19 = vpack.c.bf16 %v99_v17, %v98_v16  ;;  %v85_v21 = vld [vmem:[#allocation5 + $0x38] sm:$0xff]  ;;  %v100_v22 = vld [vmem:[#allocation7 + $0x30] sm:$0xff]  ;;  %v86_v26 = vld [vmem:[#allocation5 + $0x40] sm:$0xff]  ;;  %p3774_p4 = scmp.ne.s32.totalorder %s1951_s30, %s3773_s9  ;;  %p3779_p6 = scmp.lt.s32.totalorder %s3773_s9, %s3773_s9 }
  0x4f   :  { %3142 = vmatprep.subr.bf16.mxu1 %v3809_v0  ;;  %v101_v23 = vld [vmem:[#allocation7 + $0x38] sm:$0xff]  ;;  %v3125_v24 = vpack.c.bf16 %v85_v21, %v84_v20  ;;  %v87_v27 = vld [vmem:[#allocation5 + $0x48] sm:$0xff]  ;;  %v102_v28 = vld [vmem:[#allocation7 + $0x40] sm:$0xff] }
  0x50   :  { %v3925_v25 = vpack.c.bf16 %v101_v23, %v100_v22  ;;  %v103_v29 = vld [vmem:[#allocation7 + $0x48] sm:$0xff]  ;;  %v3128_v30 = vpack.c.bf16 %v87_v27, %v86_v26  ;;  %v88_v32 = vld [vmem:[#allocation5 + $0x50] sm:$0xff]  ;;  %v89_v33 = vld [vmem:[#allocation5 + $0x58] sm:$0xff]  ;;  %p3780_p7 = por %p3779_p6, %p3778_p5 }
  0x51   :  { %3120 = vmatpush3.bf16.msra.mxu0 %v3119_v12  ;;  %v3930_v31 = vpack.c.bf16 %v103_v29, %v102_v28  ;;  %v104_v34 = vld [vmem:[#allocation7 + $0x50] sm:$0xff]  ;;  %v105_v35 = vld [vmem:[#allocation7 + $0x58] sm:$0xff]  ;;  %v3131_v36 = vpack.c.bf16 %v89_v33, %v88_v32  ;;  %v90_v38 = vld [vmem:[#allocation5 + $0x60] sm:$0xff] }
  0x52   :  { %3144 = vmatpush3.bf16.msra.mxu1 %v3915_v13  ;;  %3121 = vmatprep.subr.bf16.mxu0 %v3809_v0  ;;  %v3935_v37 = vpack.c.bf16 %v105_v35, %v104_v34  ;;  %v91_v39 = vld [vmem:[#allocation5 + $0x68] sm:$0xff]  ;;  %v106_v40 = vld [vmem:[#allocation7 + $0x60] sm:$0xff]  ;;  %v92_v44 = vld [vmem:[#allocation5 + $0x70] sm:$0xff]  ;;  %p3781_p8 = pnand %p3780_p7, %p3774_p4 }
  0x53   :  { %3145 = vmatprep.subr.bf16.mxu1 %v3809_v0  ;;  %v107_v41 = vld [vmem:[#allocation7 + $0x68] sm:$0xff]  ;;  %v3134_v42 = vpack.c.bf16 %v91_v39, %v90_v38  ;;  %v93_v45 = vld [vmem:[#allocation5 + $0x78] sm:$0xff]  ;;  %v108_v46 = vld [vmem:[#allocation7 + $0x70] sm:$0xff] }
  0x54   :  { %v3940_v43 = vpack.c.bf16 %v107_v41, %v106_v40  ;;  %v109_v47 = vld [vmem:[#allocation7 + $0x78] sm:$0xff]  ;;  %v3137_v48 = vpack.c.bf16 %v93_v45, %v92_v44  ;;  %v497_v3 = vld [vmem:[#allocation5 + $0x80] sm:$0xff]  ;;  %v498_v4 = vld [vmem:[#allocation5 + $0x88] sm:$0xff] }
  0x55   :  { %3123 = vmatpush3.bf16.msra.mxu0 %v3122_v18  ;;  %v3945_v49 = vpack.c.bf16 %v109_v47, %v108_v46  ;;  %v77_v50 = vld [vmem:[#allocation2] sm:$0xf]  ;;  %v3236_v5 = vpack.c.bf16 %v498_v4, %v497_v3  ;;  %v499_v6 = vld [vmem:[#allocation5 + $0x90] sm:$0xff]  ;;  %v502_v10 = vld [vmem:[#allocation5 + $0xa8] sm:$0xff] }
  0x56   :  { %3147 = vmatpush3.bf16.msra.mxu1 %v3920_v19  ;;  %3124 = vmatprep.subr.bf16.mxu0 %v3809_v0  ;;  %v1961_v51 = vld [vmem:[%s4403_s3] ss:$0 sm:$0xff]  ;;  %v503_v12 = vld [vmem:[#allocation5 + $0xb0] sm:$0xff]  ;;  %v515_v20 = vld [vmem:[#allocation7 + $0x88] sm:$0xff] }
  0x57   :  { %3148 = vmatprep.subr.bf16.mxu1 %v3809_v0  ;;  %v500_v7 = vld [vmem:[#allocation5 + $0x98] sm:$0xff]  ;;  %v518_v29 = vld [vmem:[#allocation7 + $0xa0] sm:$0xff]  ;;  %v520_v32 = vld [vmem:[#allocation7 + $0xb0] sm:$0xff] }
  0x58   :  { %v3239_v8 = vpack.c.bf16 %v500_v7, %v499_v6  ;;  %v517_v26 = vld [vmem:[#allocation7 + $0x98] sm:$0xff]  ;;  %v505_v35 = vld [vmem:[#allocation5 + $0xc0] sm:$0xff]  ;;  %v523_v39 = vld [vmem:[#allocation7 + $0xc8] sm:$0xff] }
  0x59   :  { %3126 = vmatpush3.bf16.msra.mxu0 %v3125_v24  ;;  %v521_v33 = vld [vmem:[#allocation7 + $0xb8] sm:$0xff]  ;;  %v522_v38 = vld [vmem:[#allocation7 + $0xc0] sm:$0xff]  ;;  %v507_v41 = vld [vmem:[#allocation5 + $0xd0] sm:$0xff] }
  0x5a   :  { %3150 = vmatpush3.bf16.msra.mxu1 %v3925_v25  ;;  %3127 = vmatprep.subr.bf16.mxu0 %v3809_v0  ;;  %v4037_v34 = vpack.c.bf16 %v521_v33, %v520_v32  ;;  %v4042_v40 = vpack.c.bf16 %v523_v39, %v522_v38  ;;  %v524_v44 = vld [vmem:[#allocation7 + $0xd0] sm:$0xff]  ;;  %v525_v45 = vld [vmem:[#allocation7 + $0xd8] sm:$0xff]  ;;  %v509_v47 = vld [vmem:[#allocation5 + $0xe0] sm:$0xff] }
  0x5b   :  { %3151 = vmatprep.subr.bf16.mxu1 %v3809_v0  ;;  %v4047_v46 = vpack.c.bf16 %v525_v45, %v524_v44  ;;  %v923_v38 = vld [vmem:[#allocation8 + $0x48] sm:$0xff] }
  0x5c   :  { %v927_v44 = vld [vmem:[#allocation8 + $0x68] sm:$0xff] }
  0x5d   :  { %3129 = vmatpush3.bf16.msra.mxu0 %v3128_v30  ;;  %v519_v30 = vld [vmem:[#allocation7 + $0xa8] sm:$0xff] }
  0x5e   :  { %3153 = vmatpush3.bf16.msra.mxu1 %v3930_v31  ;;  %3130 = vmatprep.subr.bf16.mxu0 %v3809_v0 }
  0x5f   :  { %3154 = vmatprep.subr.bf16.mxu1 %v3809_v0 }
  0x61   :  { %3132 = vmatpush3.bf16.msra.mxu0 %v3131_v36  ;;  %v506_v36 = vld [vmem:[#allocation5 + $0xc8] sm:$0xff] }
  0x62   :  { %3156 = vmatpush3.bf16.msra.mxu1 %v3935_v37  ;;  %3133 = vmatprep.subr.bf16.mxu0 %v3809_v0 }
  0x63   :  { %3157 = vmatprep.subr.bf16.mxu1 %v3809_v0 }
  0x65   :  { %3135 = vmatpush3.bf16.msra.mxu0 %v3134_v42  ;;  %v508_v42 = vld [vmem:[#allocation5 + $0xd8] sm:$0xff] }
  0x66   :  { %3159 = vmatpush3.bf16.msra.mxu1 %v3940_v43  ;;  %3136 = vmatprep.subr.bf16.mxu0 %v3809_v0 }
  0x67   :  { %3160 = vmatprep.subr.bf16.mxu1 %v3809_v0 }
  0x69   :  { %3138 = vmatpush3.bf16.msra.mxu0 %v3137_v48  ;;  %v510_v48 = vld [vmem:[#allocation5 + $0xe8] sm:$0xff] }
  0x6a   :  { %3162 = vmatpush3.bf16.msra.mxu1 %v3945_v49  ;;  %3163 = vmatprep.subr.bf16.mxu0 %v3809_v0 }
  0x6b   :  { %3187 = vmatprep.subr.bf16.mxu1 %v3809_v0 }
  0x6c   :  { %2378 = vmatmul.mubr.f32.vlgmr.msra.gmra.mrb[0].mxu0 %v77_v50  ;;  %v3254_v50 = vpack.c.bf16 %v510_v48, %v509_v47  ;;  %v929_v47 = vld [vmem:[#allocation8 + $0x78] sm:$0xff] }
  0x6d   :  { %2413 = vmatmul.mubr.f32.vlgmr.msra.gmra.mrb[0].mxu1 %v3811_v1  ;;  %3165 = vmatpush3.bf16.msra.mxu0 %v3911_v9 }
  0x6e   :  { %3166 = vmatprep.subr.bf16.mxu0 %v3809_v0  ;;  %2447 = vmatprep.mubr.msk.f32.mxu0 %vm3810_vm0, %v3811_v1 }
  0x6f   :  { %3189 = vmatpush3.bf16.msra.mxu1 %v3911_v9  ;;  %2482 = vmatprep.mubr.msk.f32.mxu1 %vm3810_vm0, %v3811_v1 }
  0x70   :  { %3190 = vmatprep.subr.bf16.mxu1 %v3809_v0 }
  0x71   :  { %3168 = vmatpush3.bf16.msra.mxu0 %v3915_v13 }
  0x72   :  { %3169 = vmatprep.subr.bf16.mxu0 %v3809_v0 }
  0x73   :  { %3192 = vmatpush3.bf16.msra.mxu1 %v3915_v13 }
  0x74   :  { %3193 = vmatprep.subr.bf16.mxu1 %v3809_v0 }
  0x75   :  { %3171 = vmatpush3.bf16.msra.mxu0 %v3920_v19 }
  0x76   :  { %3172 = vmatprep.subr.bf16.mxu0 %v3809_v0 }
  0x77   :  { %3195 = vmatpush3.bf16.msra.mxu1 %v3920_v19 }
  0x78   :  { %3196 = vmatprep.subr.bf16.mxu1 %v3809_v0 }
  0x79   :  { %3174 = vmatpush3.bf16.msra.mxu0 %v3925_v25 }
  0x7a   :  { %3175 = vmatprep.subr.bf16.mxu0 %v3809_v0 }
  0x7b   :  { %3198 = vmatpush3.bf16.msra.mxu1 %v3925_v25 }
  0x7c   :  { %3199 = vmatprep.subr.bf16.mxu1 %v3809_v0 }
  0x7d   :  { %3177 = vmatpush3.bf16.msra.mxu0 %v3930_v31 }
  0x7e   :  { %3178 = vmatprep.subr.bf16.mxu0 %v3809_v0 }
  0x7f   :  { %3201 = vmatpush3.bf16.msra.mxu1 %v3930_v31 }
  0x80   :  { %3202 = vmatprep.subr.bf16.mxu1 %v3809_v0 }
  0x81   :  { %3180 = vmatpush3.bf16.msra.mxu0 %v3935_v37 }
  0x82   :  { %3181 = vmatprep.subr.bf16.mxu0 %v3809_v0 }
  0x83   :  { %3204 = vmatpush3.bf16.msra.mxu1 %v3935_v37 }
  0x84   :  { %3205 = vmatprep.subr.bf16.mxu1 %v3809_v0 }
  0x85   :  { %3183 = vmatpush3.bf16.msra.mxu0 %v3940_v43 }
  0x86   :  { %3184 = vmatprep.subr.bf16.mxu0 %v3809_v0 }
  0x87   :  { %3207 = vmatpush3.bf16.msra.mxu1 %v3940_v43 }
  0x88   :  { %3208 = vmatprep.subr.bf16.mxu1 %v3809_v0 }
  0x89   :  { %3186 = vmatpush3.bf16.msra.mxu0 %v3945_v49 }
  0x8a   :  { %3211 = vmatprep.subr.bf16.mxu0 %v3809_v0 }
  0x8b   :  { %3210 = vmatpush3.bf16.msra.mxu1 %v3945_v49 }
  0x8c   :  { %3235 = vmatprep.subr.bf16.mxu1 %v3809_v0 }
 0x13f   :  { %v183_v52 = vpop.f32.mrb[0].mxu0 }
 0x140   :  { %v3991_v53 = vadd.f32 %v1961_v51, %v183_v52  ;;  %v2379_v54 = vpop.f32.mrb[1].mxu0  ;;  %v253_v55 = vpop.f32.mrb[0].mxu1  ;;  %v527_v51 = vld [vmem:[#allocation7 + $0xe8] sm:$0xff] }
 0x141   :  { %v2414_v56 = vpop.f32.mrb[1].mxu1  ;;  %v511_v54 = vld [vmem:[#allocation5 + $0xf0] sm:$0xff] }
 0x142   :  { %v257_v57 = vadd.f32 %v253_v55, %v3991_v53  ;;  %v512_v55 = vld [vmem:[#allocation5 + $0xf8] sm:$0xff]  ;;  %v528_v56 = vld [vmem:[#allocation7 + $0xf0] sm:$0xff] }
 0x144   :  { %3653 = vtanh.f32 %v257_v57  ;;  %v529_v57 = vld [vmem:[#allocation7 + $0xf8] sm:$0xff] }
 0x14e   :  { %v3654_v58 = vpop.eup %3653 }
 0x14f   :  { %2448 = vmatmul.mubr.f32.vlgmr.msra.gmra.mrb[2].mxu0 %v3654_v58 }
 0x150   :  { %3213 = vmatpush3.bf16.msra.mxu0 %v3911_v9  ;;  %2517 = vmatprep.mubr.msk.f32.mxu0 %vm3810_vm0, %v3811_v1  ;;  %v501_v9 = vld [vmem:[#allocation5 + $0xa0] sm:$0xff] }
 0x151   :  { %3214 = vmatprep.subr.bf16.mxu0 %v3809_v0  ;;  %v3242_v11 = vpack.c.bf16 %v502_v10, %v501_v9 }
 0x154   :  { %3216 = vmatpush3.bf16.msra.mxu0 %v3915_v13  ;;  %v504_v13 = vld [vmem:[#allocation5 + $0xb8] sm:$0xff] }
 0x155   :  { %3217 = vmatprep.subr.bf16.mxu0 %v3809_v0  ;;  %v3245_v14 = vpack.c.bf16 %v504_v13, %v503_v12 }
 0x158   :  { %3219 = vmatpush3.bf16.msra.mxu0 %v3920_v19  ;;  %v514_v19 = vld [vmem:[#allocation7 + $0x80] sm:$0xff] }
 0x159   :  { %3220 = vmatprep.subr.bf16.mxu0 %v3809_v0  ;;  %v4020_v22 = vpack.c.bf16 %v515_v20, %v514_v19  ;;  %v916_v19 = vld [vmem:[#allocation8 + $0x10] sm:$0xff] }
 0x15c   :  { %3222 = vmatpush3.bf16.msra.mxu0 %v3925_v25  ;;  %v516_v25 = vld [vmem:[#allocation7 + $0x90] sm:$0xff] }
 0x15d   :  { %3223 = vmatprep.subr.bf16.mxu0 %v3809_v0  ;;  %v4027_v28 = vpack.c.bf16 %v517_v26, %v516_v25  ;;  %v920_v26 = vld [vmem:[#allocation8 + $0x30] sm:$0xff] }
 0x160   :  { %3225 = vmatpush3.bf16.msra.mxu0 %v3930_v31  ;;  %v4033_v31 = vpack.c.bf16 %v519_v30, %v518_v29 }
 0x161   :  { %3226 = vmatprep.subr.bf16.mxu0 %v3809_v0 }
 0x164   :  { %3228 = vmatpush3.bf16.msra.mxu0 %v3935_v37  ;;  %v3248_v37 = vpack.c.bf16 %v506_v36, %v505_v35 }
 0x165   :  { %3229 = vmatprep.subr.bf16.mxu0 %v3809_v0 }
 0x168   :  { %3231 = vmatpush3.bf16.msra.mxu0 %v3940_v43  ;;  %v3251_v43 = vpack.c.bf16 %v508_v42, %v507_v41  ;;  %v925_v41 = vld [vmem:[#allocation8 + $0x58] sm:$0xff] }
 0x169   :  { %3232 = vmatprep.subr.bf16.mxu0 %v3809_v0 }
 0x16c   :  { %3234 = vmatpush3.bf16.msra.mxu0 %v3945_v49  ;;  %v526_v49 = vld [vmem:[#allocation7 + $0xe0] sm:$0xff] }
 0x16d   :  { %3259 = vmatprep.subr.bf16.mxu0 %v3809_v0  ;;  %v4051_v52 = vpack.c.bf16 %v527_v51, %v526_v49  ;;  %v1008_v49 = vld [vmem:[#allocation5 + $0x100] sm:$0xff] }
 0x222   :  { %v325_v59 = vpop.f32.mrb[2].mxu0 }
 0x223   :  { %v330_v60 = vrot.slane %v325_v59, 7  ;;  %v2449_v61 = vpop.f32.mrb[3].mxu0  ;;  %v4056_v59 = vpack.c.bf16 %v529_v57, %v528_v56  ;;  %v1012_v56 = vld [vmem:[#allocation5 + $0x120] sm:$0xff]  ;;  %v1013_v57 = vld [vmem:[#allocation5 + $0x128] sm:$0xff] }
 0x225   :  { %v332_v62 = vadd.f32 %v330_v60, %v3991_v53 }
 0x227   :  { %3655 = vtanh.f32 %v332_v62 }
 0x231   :  { %v3656_v63 = vpop.eup %3655 }
 0x232   :  { %v335_v2 = vrot.slane %v3656_v63, 1  ;;  %v491_v23 = vsel %vm490_vm1, %v3654_v58, %v3656_v63  ;;  %v3257_v58 = vpack.c.bf16 %v512_v55, %v511_v54  ;;  %v1011_v54 = vld [vmem:[#allocation5 + $0x118] sm:$0xff] }
 0x234   :  { %2483 = vmatmul.mubr.f32.vlgmr.msra.gmra.mrb[2].mxu1 %v335_v2 }
 0x235   :  { %2552 = vmatprep.mubr.msk.f32.mxu1 %vm3810_vm0, %v3811_v1  ;;  %3237 = vmatpush3.bf16.msra.mxu1 %v3236_v5  ;;  %v1963_v5 = vld [vmem:[%s4403_s3 + $0x1] ss:$0 sm:$0xff] }
 0x236   :  { %3238 = vmatprep.subr.bf16.mxu1 %v3809_v0 }
 0x239   :  { %3240 = vmatpush3.bf16.msra.mxu1 %v3239_v8 }
 0x23a   :  { %3241 = vmatprep.subr.bf16.mxu1 %v3809_v0 }
 0x23d   :  { %3243 = vmatpush3.bf16.msra.mxu1 %v3242_v11 }
 0x23e   :  { %3244 = vmatprep.subr.bf16.mxu1 %v3809_v0 }
 0x241   :  { %3246 = vmatpush3.bf16.msra.mxu1 %v3245_v14 }
 0x242   :  { %3247 = vmatprep.subr.bf16.mxu1 %v3809_v0 }
 0x245   :  { %3249 = vmatpush3.bf16.msra.mxu1 %v3248_v37  ;;  %v922_v37 = vld [vmem:[#allocation8 + $0x40] sm:$0xff] }
 0x246   :  { %3250 = vmatprep.subr.bf16.mxu1 %v3809_v0  ;;  %v3368_v39 = vpack.c.bf16 %v923_v38, %v922_v37  ;;  %v1039_v38 = vld [vmem:[#allocation7 + $0x170] sm:$0xff] }
 0x249   :  { %3252 = vmatpush3.bf16.msra.mxu1 %v3251_v43  ;;  %v926_v43 = vld [vmem:[#allocation8 + $0x60] sm:$0xff] }
 0x24a   :  { %3253 = vmatprep.subr.bf16.mxu1 %v3809_v0  ;;  %v3374_v45 = vpack.c.bf16 %v927_v44, %v926_v43 }
 0x24d   :  { %3255 = vmatpush3.bf16.msra.mxu1 %v3254_v50  ;;  %v1009_v50 = vld [vmem:[#allocation5 + $0x108] sm:$0xff] }
 0x24e   :  { %3256 = vmatprep.subr.bf16.mxu1 %v3809_v0  ;;  %v3380_v51 = vpack.c.bf16 %v1009_v50, %v1008_v49 }
 0x251   :  { %3258 = vmatpush3.bf16.msra.mxu1 %v3257_v58  ;;  %v3386_v58 = vpack.c.bf16 %v1013_v57, %v1012_v56 }
 0x252   :  { %3283 = vmatprep.subr.bf16.mxu1 %v3809_v0 }
 0x307   :  { %v403_v15 = vpop.f32.mrb[2].mxu1 }
 0x308   :  { %v408_v16 = vrot.slane %v403_v15, 6  ;;  %v2484_v17 = vpop.f32.mrb[3].mxu1 }
 0x309   :  { %v914_v17 = vld [vmem:[#allocation8] sm:$0xff] }
 0x30a   :  { %v410_v18 = vadd.f32 %v408_v16, %v3991_v53 }
 0x30c   :  { %3657 = vtanh.f32 %v410_v18  ;;  %v915_v18 = vld [vmem:[#allocation8 + $0x8] sm:$0xff] }
 0x30d   :  { %v3356_v20 = vpack.c.bf16 %v915_v18, %v914_v17  ;;  %v1027_v17 = vld [vmem:[#allocation7 + $0x110] sm:$0xff]  ;;  %v1028_v18 = vld [vmem:[#allocation7 + $0x118] sm:$0xff] }
 0x316   :  { %v3658_v21 = vpop.eup %3657 }
 0x317   :  { %v413_v24 = vrot.slane %v3658_v21, 2  ;;  %v4024_v27 = vsel %vm492_vm2, %v491_v23, %v3658_v21  ;;  %v917_v21 = vld [vmem:[#allocation8 + $0x18] sm:$0xff]  ;;  %v918_v23 = vld [vmem:[#allocation8 + $0x20] sm:$0xff] }
 0x319   :  { %2518 = vmatmul.mubr.f32.vlgmr.msra.gmra.mrb[4].mxu0 %v413_v24  ;;  %v919_v24 = vld [vmem:[#allocation8 + $0x28] sm:$0xff] }
 0x31a   :  { %3261 = vmatpush3.bf16.msra.mxu0 %v4020_v22  ;;  %2587 = vmatprep.mubr.msk.f32.mxu0 %vm3810_vm0, %v3811_v1  ;;  %v3362_v25 = vpack.c.bf16 %v919_v24, %v918_v23  ;;  %v1031_v23 = vld [vmem:[#allocation7 + $0x130] sm:$0xff]  ;;  %v1032_v24 = vld [vmem:[#allocation7 + $0x138] sm:$0xff] }
 0x31b   :  { %3262 = vmatprep.subr.bf16.mxu0 %v3809_v0 }
 0x31e   :  { %3264 = vmatpush3.bf16.msra.mxu0 %v4027_v28 }
 0x31f   :  { %3265 = vmatprep.subr.bf16.mxu0 %v3809_v0 }
 0x322   :  { %3267 = vmatpush3.bf16.msra.mxu0 %v4033_v31 }
 0x323   :  { %3268 = vmatprep.subr.bf16.mxu0 %v3809_v0 }
 0x326   :  { %3270 = vmatpush3.bf16.msra.mxu0 %v4037_v34 }
 0x327   :  { %3271 = vmatprep.subr.bf16.mxu0 %v3809_v0 }
 0x32a   :  { %3273 = vmatpush3.bf16.msra.mxu0 %v4042_v40 }
 0x32b   :  { %3274 = vmatprep.subr.bf16.mxu0 %v3809_v0 }
 0x32e   :  { %3276 = vmatpush3.bf16.msra.mxu0 %v4047_v46 }
 0x32f   :  { %3277 = vmatprep.subr.bf16.mxu0 %v3809_v0 }
 0x332   :  { %3279 = vmatpush3.bf16.msra.mxu0 %v4051_v52 }
 0x333   :  { %3280 = vmatprep.subr.bf16.mxu0 %v3809_v0 }
 0x336   :  { %3282 = vmatpush3.bf16.msra.mxu0 %v4056_v59 }
 0x337   :  { %3307 = vmatprep.subr.bf16.mxu0 %v3809_v0 }
 0x339   :  { %2588 = vmatmul.mubr.f32.vlgmr.msra.gmra.mrb[6].mxu0 %v3811_v1 }
 0x33a   :  { %3309 = vmatpush3.bf16.msra.mxu0 %v4020_v22  ;;  %2657 = vmatprep.mubr.msk.f32.mxu0 %vm3810_vm0, %v3811_v1 }
 0x33b   :  { %3310 = vmatprep.subr.bf16.mxu0 %v3809_v0 }
 0x33e   :  { %3312 = vmatpush3.bf16.msra.mxu0 %v4027_v28 }
 0x33f   :  { %3313 = vmatprep.subr.bf16.mxu0 %v3809_v0 }
 0x342   :  { %3315 = vmatpush3.bf16.msra.mxu0 %v4033_v31 }
 0x343   :  { %3316 = vmatprep.subr.bf16.mxu0 %v3809_v0 }
 0x346   :  { %3318 = vmatpush3.bf16.msra.mxu0 %v4037_v34 }
 0x347   :  { %3319 = vmatprep.subr.bf16.mxu0 %v3809_v0 }
 0x34a   :  { %3321 = vmatpush3.bf16.msra.mxu0 %v4042_v40 }
 0x34b   :  { %3322 = vmatprep.subr.bf16.mxu0 %v3809_v0 }
 0x34e   :  { %3324 = vmatpush3.bf16.msra.mxu0 %v4047_v46 }
 0x34f   :  { %3325 = vmatprep.subr.bf16.mxu0 %v3809_v0 }
 0x352   :  { %3327 = vmatpush3.bf16.msra.mxu0 %v4051_v52 }
 0x353   :  { %3328 = vmatprep.subr.bf16.mxu0 %v3809_v0 }
 0x356   :  { %3330 = vmatpush3.bf16.msra.mxu0 %v4056_v59 }
 0x357   :  { %3355 = vmatprep.subr.bf16.mxu0 %v3809_v0 }
 0x3ec   :  { %v481_v60 = vpop.f32.mrb[4].mxu0 }
 0x3ed   :  { %v486_v61 = vrot.slane %v481_v60, 5  ;;  %v2519_v62 = vpop.f32.mrb[5].mxu0  ;;  %v1015_v60 = vld [vmem:[#allocation5 + $0x138] sm:$0xff] }
 0x3ee   :  { %v1016_v62 = vld [vmem:[#allocation5 + $0x140] sm:$0xff] }
 0x3ef   :  { %v488_v63 = vadd.f32 %v486_v61, %v3991_v53 }
 0x3f1   :  { %3659 = vtanh.f32 %v488_v63  ;;  %v1017_v63 = vld [vmem:[#allocation5 + $0x148] sm:$0xff] }
 0x3fb   :  { %v3660_v2 = vpop.eup %3659 }
 0x3fc   :  { %v495_v3 = vsel %vm494_vm3, %v4024_v27, %v3660_v2  ;;  %v921_v27 = vld [vmem:[#allocation8 + $0x38] sm:$0xff]  ;;  %v3392_v2 = vpack.c.bf16 %v1017_v63, %v1016_v62  ;;  %v1428_v63 = vld [vmem:[#allocation5 + $0x190] sm:$0xff] }
 0x3fd   :  { %2553 = vmatmul.mubr.f32.vlgmr.msra.gmra.mrb[4].mxu1 %v495_v3  ;;  %v1018_v3 = vld [vmem:[#allocation5 + $0x150] sm:$0xff] }
 0x3fe   :  { %3285 = vmatpush3.bf16.msra.mxu1 %v4020_v22  ;;  %2622 = vmatprep.mubr.msk.f32.mxu1 %vm3810_vm0, %v3811_v1 }
 0x3ff   :  { %3286 = vmatprep.subr.bf16.mxu1 %v3809_v0 }
 0x402   :  { %3288 = vmatpush3.bf16.msra.mxu1 %v4027_v28 }
 0x403   :  { %3289 = vmatprep.subr.bf16.mxu1 %v3809_v0 }
 0x406   :  { %3291 = vmatpush3.bf16.msra.mxu1 %v4033_v31 }
 0x407   :  { %3292 = vmatprep.subr.bf16.mxu1 %v3809_v0 }
 0x40a   :  { %3294 = vmatpush3.bf16.msra.mxu1 %v4037_v34 }
 0x40b   :  { %3295 = vmatprep.subr.bf16.mxu1 %v3809_v0 }
 0x40c   :  { %v674_v53 = vpop.f32.mrb[6].mxu0 }
 0x40d   :  { %v2589_v4 = vpop.f32.mrb[7].mxu0 }
 0x40e   :  { %3297 = vmatpush3.bf16.msra.mxu1 %v4042_v40 }
 0x40f   :  { %3298 = vmatprep.subr.bf16.mxu1 %v3809_v0 }
 0x412   :  { %3300 = vmatpush3.bf16.msra.mxu1 %v4047_v46 }
 0x413   :  { %3301 = vmatprep.subr.bf16.mxu1 %v3809_v0 }
 0x416   :  { %3303 = vmatpush3.bf16.msra.mxu1 %v4051_v52 }
 0x417   :  { %3304 = vmatprep.subr.bf16.mxu1 %v3809_v0 }
 0x41a   :  { %3306 = vmatpush3.bf16.msra.mxu1 %v4056_v59 }
 0x41b   :  { %3331 = vmatprep.subr.bf16.mxu1 %v3809_v0 }
 0x4d0   :  { %v604_v6 = vpop.f32.mrb[4].mxu1 }
 0x4d1   :  { %v4105_v7 = vadd.f32 %v1963_v5, %v604_v6  ;;  %v2554_v8 = vpop.f32.mrb[5].mxu1  ;;  %v1020_v5 = vld [vmem:[#allocation5 + $0x160] sm:$0xff]  ;;  %v1021_v6 = vld [vmem:[#allocation5 + $0x168] sm:$0xff] }
 0x4d2   :  { %v3398_v8 = vpack.c.bf16 %v1021_v6, %v1020_v5  ;;  %v1432_v6 = vld [vmem:[#allocation5 + $0x1b0] sm:$0xff] }
 0x4d3   :  { %v678_v9 = vadd.f32 %v674_v53, %v4105_v7  ;;  %v1019_v53 = vld [vmem:[#allocation5 + $0x158] sm:$0xff] }
 0x4d4   :  { %v3395_v4 = vpack.c.bf16 %v1019_v53, %v1018_v3  ;;  %v1430_v53 = vld [vmem:[#allocation5 + $0x1a0] sm:$0xff] }
 0x4d5   :  { %3661 = vtanh.f32 %v678_v9 }
 0x4df   :  { %v3662_v10 = vpop.eup %3661 }
 0x4e0   :  { %2623 = vmatmul.mubr.f32.vlgmr.msra.gmra.mrb[6].mxu1 %v3662_v10 }
 0x4e1   :  { %3333 = vmatpush3.bf16.msra.mxu1 %v4020_v22  ;;  %2692 = vmatprep.mubr.msk.f32.mxu1 %vm3810_vm0, %v3811_v1  ;;  %v3359_v22 = vpack.c.bf16 %v917_v21, %v916_v19  ;;  %v1030_v21 = vld [vmem:[#allocation7 + $0x128] sm:$0xff] }
 0x4e2   :  { %3334 = vmatprep.subr.bf16.mxu1 %v3809_v0 }
 0x4e5   :  { %3336 = vmatpush3.bf16.msra.mxu1 %v4027_v28  ;;  %v3365_v28 = vpack.c.bf16 %v921_v27, %v920_v26  ;;  %v1033_v26 = vld [vmem:[#allocation7 + $0x140] sm:$0xff]  ;;  %v1034_v27 = vld [vmem:[#allocation7 + $0x148] sm:$0xff] }
 0x4e6   :  { %3337 = vmatprep.subr.bf16.mxu1 %v3809_v0 }
 0x4e9   :  { %3339 = vmatpush3.bf16.msra.mxu1 %v4033_v31 }
 0x4ea   :  { %3340 = vmatprep.subr.bf16.mxu1 %v3809_v0 }
 0x4ed   :  { %3342 = vmatpush3.bf16.msra.mxu1 %v4037_v34 }
 0x4ee   :  { %3343 = vmatprep.subr.bf16.mxu1 %v3809_v0 }
 0x4f1   :  { %3345 = vmatpush3.bf16.msra.mxu1 %v4042_v40  ;;  %v924_v40 = vld [vmem:[#allocation8 + $0x50] sm:$0xff] }
 0x4f2   :  { %3346 = vmatprep.subr.bf16.mxu1 %v3809_v0  ;;  %v3371_v42 = vpack.c.bf16 %v925_v41, %v924_v40  ;;  %v1964_v41 = vld [vmem:[%s4405_s5] ss:$0 sm:$0xff] }
 0x4f5   :  { %3348 = vmatpush3.bf16.msra.mxu1 %v4047_v46  ;;  %v928_v46 = vld [vmem:[#allocation8 + $0x70] sm:$0xff] }
 0x4f6   :  { %3349 = vmatprep.subr.bf16.mxu1 %v3809_v0  ;;  %v3377_v48 = vpack.c.bf16 %v929_v47, %v928_v46  ;;  %v1966_v47 = vld [vmem:[%s4403_s3 + $0x2] ss:$0 sm:$0xff] }
 0x4f9   :  { %3351 = vmatpush3.bf16.msra.mxu1 %v4051_v52  ;;  %v1010_v52 = vld [vmem:[#allocation5 + $0x110] sm:$0xff] }
 0x4fa   :  { %3352 = vmatprep.subr.bf16.mxu1 %v3809_v0  ;;  %v3383_v55 = vpack.c.bf16 %v1011_v54, %v1010_v52 }
 0x4fd   :  { %3354 = vmatpush3.bf16.msra.mxu1 %v4056_v59  ;;  %v1014_v59 = vld [vmem:[#allocation5 + $0x130] sm:$0xff] }
 0x4fe   :  { %3379 = vmatprep.subr.bf16.mxu1 %v3809_v0  ;;  %v3389_v61 = vpack.c.bf16 %v1015_v60, %v1014_v59  ;;  %v1426_v60 = vld [vmem:[#allocation5 + $0x180] sm:$0xff] }
 0x5b3   :  { %v746_v11 = vpop.f32.mrb[6].mxu1 }
 0x5b4   :  { %v751_v12 = vrot.slane %v746_v11, 7  ;;  %v2624_v13 = vpop.f32.mrb[7].mxu1 }
 0x5b5   :  { %v1025_v13 = vld [vmem:[#allocation7 + $0x100] sm:$0xff] }
 0x5b6   :  { %v753_v14 = vadd.f32 %v751_v12, %v4105_v7 }
 0x5b8   :  { %3663 = vtanh.f32 %v753_v14  ;;  %v1026_v14 = vld [vmem:[#allocation7 + $0x108] sm:$0xff] }
 0x5c2   :  { %v3664_v15 = vpop.eup %3663 }
 0x5c3   :  { %v756_v16 = vrot.slane %v3664_v15, 1  ;;  %v911_v34 = vsel %vm490_vm1, %v3662_v10, %v3664_v15  ;;  %v4152_v15 = vpack.c.bf16 %v1026_v14, %v1025_v13  ;;  %v1443_v14 = vld [vmem:[#allocation7 + $0x180] sm:$0xff] }
 0x5c5   :  { %2658 = vmatmul.mubr.f32.vlgmr.msra.gmra.mrb[8].mxu0 %v756_v16 }
 0x5c6   :  { %2727 = vmatprep.mubr.msk.f32.mxu0 %vm3810_vm0, %v3811_v1  ;;  %3357 = vmatpush3.bf16.msra.mxu0 %v3356_v20  ;;  %v4157_v20 = vpack.c.bf16 %v1028_v18, %v1027_v17 }
 0x5c7   :  { %3358 = vmatprep.subr.bf16.mxu0 %v3809_v0 }
 0x5ca   :  { %3360 = vmatpush3.bf16.msra.mxu0 %v3359_v22 }
 0x5cb   :  { %3361 = vmatprep.subr.bf16.mxu0 %v3809_v0 }
 0x5ce   :  { %3363 = vmatpush3.bf16.msra.mxu0 %v3362_v25  ;;  %v4167_v25 = vpack.c.bf16 %v1032_v24, %v1031_v23  ;;  %v1447_v23 = vld [vmem:[#allocation7 + $0x1a0] sm:$0xff]  ;;  %v1448_v24 = vld [vmem:[#allocation7 + $0x1a8] sm:$0xff] }
 0x5cf   :  { %3364 = vmatprep.subr.bf16.mxu0 %v3809_v0 }
 0x5d2   :  { %3366 = vmatpush3.bf16.msra.mxu0 %v3365_v28  ;;  %v4171_v28 = vpack.c.bf16 %v1034_v27, %v1033_v26  ;;  %v1449_v26 = vld [vmem:[#allocation7 + $0x1b0] sm:$0xff]  ;;  %v1450_v27 = vld [vmem:[#allocation7 + $0x1b8] sm:$0xff] }
 0x5d3   :  { %3367 = vmatprep.subr.bf16.mxu0 %v3809_v0 }
 0x5d6   :  { %3369 = vmatpush3.bf16.msra.mxu0 %v3368_v39  ;;  %v1040_v39 = vld [vmem:[#allocation7 + $0x178] sm:$0xff] }
 0x5d7   :  { %3370 = vmatprep.subr.bf16.mxu0 %v3809_v0  ;;  %v4184_v40 = vpack.c.bf16 %v1040_v39, %v1039_v38  ;;  %v1453_v38 = vld [vmem:[#allocation7 + $0x1d0] sm:$0xff]  ;;  %v1454_v39 = vld [vmem:[#allocation7 + $0x1d8] sm:$0xff] }
 0x5da   :  { %3372 = vmatpush3.bf16.msra.mxu0 %v3371_v42 }
 0x5db   :  { %3373 = vmatprep.subr.bf16.mxu0 %v3809_v0 }
 0x5de   :  { %3375 = vmatpush3.bf16.msra.mxu0 %v3374_v45 }
 0x5df   :  { %3376 = vmatprep.subr.bf16.mxu0 %v3809_v0 }
 0x5e2   :  { %3378 = vmatpush3.bf16.msra.mxu0 %v3377_v48 }
 0x5e3   :  { %3403 = vmatprep.subr.bf16.mxu0 %v3809_v0 }
 0x698   :  { %v824_v29 = vpop.f32.mrb[8].mxu0 }
 0x699   :  { %v829_v30 = vrot.slane %v824_v29, 6  ;;  %v2659_v31 = vpop.f32.mrb[9].mxu0  ;;  %v1035_v29 = vld [vmem:[#allocation7 + $0x150] sm:$0xff] }
 0x69b   :  { %v831_v32 = vadd.f32 %v829_v30, %v4105_v7  ;;  %v1036_v30 = vld [vmem:[#allocation7 + $0x158] sm:$0xff] }
 0x69c   :  { %v4175_v31 = vpack.c.bf16 %v1036_v30, %v1035_v29  ;;  %v1434_v29 = vld [vmem:[#allocation5 + $0x1c0] sm:$0xff]  ;;  %v1435_v30 = vld [vmem:[#allocation5 + $0x1c8] sm:$0xff] }
 0x69d   :  { %3665 = vtanh.f32 %v831_v32  ;;  %v1037_v32 = vld [vmem:[#allocation7 + $0x160] sm:$0xff] }
 0x6a7   :  { %v3666_v33 = vpop.eup %3665 }
 0x6a8   :  { %v834_v35 = vrot.slane %v3666_v33, 2  ;;  %v4136_v36 = vsel %vm492_vm2, %v911_v34, %v3666_v33  ;;  %v1038_v33 = vld [vmem:[#allocation7 + $0x168] sm:$0xff] }
 0x6a9   :  { %v4179_v34 = vpack.c.bf16 %v1038_v33, %v1037_v32  ;;  %v1451_v32 = vld [vmem:[#allocation7 + $0x1c0] sm:$0xff]  ;;  %v1452_v33 = vld [vmem:[#allocation7 + $0x1c8] sm:$0xff] }
 0x6aa   :  { %2693 = vmatmul.mubr.f32.vlgmr.msra.gmra.mrb[8].mxu1 %v834_v35  ;;  %v1022_v35 = vld [vmem:[#allocation5 + $0x170] sm:$0xff] }
 0x6ab   :  { %2762 = vmatprep.mubr.msk.f32.mxu1 %vm3810_vm0, %v3811_v1  ;;  %3381 = vmatpush3.bf16.msra.mxu1 %v3380_v51 }
 0x6ac   :  { %3382 = vmatprep.subr.bf16.mxu1 %v3809_v0 }
 0x6af   :  { %3384 = vmatpush3.bf16.msra.mxu1 %v3383_v55 }
 0x6b0   :  { %3385 = vmatprep.subr.bf16.mxu1 %v3809_v0 }
 0x6b3   :  { %3387 = vmatpush3.bf16.msra.mxu1 %v3386_v58 }
 0x6b4   :  { %3388 = vmatprep.subr.bf16.mxu1 %v3809_v0 }
 0x6b7   :  { %3390 = vmatpush3.bf16.msra.mxu1 %v3389_v61  ;;  %v1427_v61 = vld [vmem:[#allocation5 + $0x188] sm:$0xff] }
 0x6b8   :  { %3391 = vmatprep.subr.bf16.mxu1 %v3809_v0  ;;  %v3500_v62 = vpack.c.bf16 %v1427_v61, %v1426_v60 }
 0x6bb   :  { %3393 = vmatpush3.bf16.msra.mxu1 %v3392_v2  ;;  %v1429_v2 = vld [vmem:[#allocation5 + $0x198] sm:$0xff] }
 0x6bc   :  { %3394 = vmatprep.subr.bf16.mxu1 %v3809_v0  ;;  %v3503_v3 = vpack.c.bf16 %v1429_v2, %v1428_v63  ;;  %v1968_v63 = vld [vmem:[%s4403_s3 + $0x3] ss:$0 sm:$0xff] }
 0x6bf   :  { %3396 = vmatpush3.bf16.msra.mxu1 %v3395_v4  ;;  %v1431_v4 = vld [vmem:[#allocation5 + $0x1a8] sm:$0xff] }
 0x6c0   :  { %3397 = vmatprep.subr.bf16.mxu1 %v3809_v0  ;;  %v3506_v5 = vpack.c.bf16 %v1431_v4, %v1430_v53 }
 0x6c3   :  { %3399 = vmatpush3.bf16.msra.mxu1 %v3398_v8  ;;  %v1433_v8 = vld [vmem:[#allocation5 + $0x1b8] sm:$0xff] }
 0x6c4   :  { %3400 = vmatprep.subr.bf16.mxu1 %v3809_v0 }
 0x77d   :  { %v902_v9 = vpop.f32.mrb[8].mxu1 }
 0x77e   :  { %v907_v10 = vrot.slane %v902_v9, 5  ;;  %v2694_v11 = vpop.f32.mrb[9].mxu1  ;;  %v3509_v9 = vpack.c.bf16 %v1433_v8, %v1432_v6 }
 0x780   :  { %v909_v12 = vadd.f32 %v907_v10, %v4105_v7  ;;  %v1029_v7 = vld [vmem:[#allocation7 + $0x120] sm:$0xff] }
 0x781   :  { %v4163_v22 = vpack.c.bf16 %v1030_v21, %v1029_v7  ;;  %v1446_v7 = vld [vmem:[#allocation7 + $0x198] sm:$0xff] }
 0x782   :  { %3667 = vtanh.f32 %v909_v12 }
 0x78c   :  { %v3668_v16 = vpop.eup %3667 }
 0x78d   :  { %v913_v19 = vsel %vm494_vm3, %v4136_v36, %v3668_v16  ;;  %v1023_v36 = vld [vmem:[#allocation5 + $0x178] sm:$0xff] }
 0x78e   :  { %2728 = vmatmul.mubr.f32.vlgmr.msra.gmra.mrb[10].mxu0 %v913_v19  ;;  %v3401_v37 = vpack.c.bf16 %v1023_v36, %v1022_v35  ;;  %v1436_v35 = vld [vmem:[#allocation5 + $0x1d0] sm:$0xff]  ;;  %v1437_v36 = vld [vmem:[#allocation5 + $0x1d8] sm:$0xff] }
 0x78f   :  { %3405 = vmatpush3.bf16.msra.mxu0 %v4152_v15  ;;  %2797 = vmatprep.mubr.msk.f32.mxu0 %vm3810_vm0, %v3811_v1 }
 0x790   :  { %3406 = vmatprep.subr.bf16.mxu0 %v3809_v0  ;;  %3402 = vmatpush3.bf16.msra.mxu1 %v3401_v37  ;;  %v3515_v37 = vpack.c.bf16 %v1437_v36, %v1436_v35  ;;  %v1855_v35 = vld [vmem:[#allocation8 + $0xd8] sm:$0xff] }
 0x791   :  { %3427 = vmatprep.subr.bf16.mxu1 %v3809_v0 }
 0x793   :  { %3408 = vmatpush3.bf16.msra.mxu0 %v4157_v20 }
 0x794   :  { %3409 = vmatprep.subr.bf16.mxu0 %v3809_v0 }
 0x797   :  { %3411 = vmatpush3.bf16.msra.mxu0 %v4163_v22 }
 0x798   :  { %3412 = vmatprep.subr.bf16.mxu0 %v3809_v0 }
 0x79b   :  { %3414 = vmatpush3.bf16.msra.mxu0 %v4167_v25 }
 0x79c   :  { %3415 = vmatprep.subr.bf16.mxu0 %v3809_v0 }
 0x79f   :  { %3417 = vmatpush3.bf16.msra.mxu0 %v4171_v28 }
 0x7a0   :  { %3418 = vmatprep.subr.bf16.mxu0 %v3809_v0 }
 0x7a3   :  { %3420 = vmatpush3.bf16.msra.mxu0 %v4175_v31 }
 0x7a4   :  { %3421 = vmatprep.subr.bf16.mxu0 %v3809_v0 }
 0x7a7   :  { %3423 = vmatpush3.bf16.msra.mxu0 %v4179_v34 }
 0x7a8   :  { %3424 = vmatprep.subr.bf16.mxu0 %v3809_v0 }
 0x7ab   :  { %3426 = vmatpush3.bf16.msra.mxu0 %v4184_v40 }
 0x7ac   :  { %3451 = vmatprep.subr.bf16.mxu0 %v3809_v0 }
 0x7ae   :  { %2798 = vmatmul.mubr.f32.vlgmr.msra.gmra.mrb[12].mxu0 %v3811_v1 }
 0x7af   :  { %3453 = vmatpush3.bf16.msra.mxu0 %v4152_v15  ;;  %2867 = vmatprep.mubr.msk.f32.mxu0 %vm3810_vm0, %v3811_v1 }
 0x7b0   :  { %3454 = vmatprep.subr.bf16.mxu0 %v3809_v0 }
 0x7b3   :  { %3456 = vmatpush3.bf16.msra.mxu0 %v4157_v20 }
 0x7b4   :  { %3457 = vmatprep.subr.bf16.mxu0 %v3809_v0 }
 0x7b7   :  { %3459 = vmatpush3.bf16.msra.mxu0 %v4163_v22 }
 0x7b8   :  { %3460 = vmatprep.subr.bf16.mxu0 %v3809_v0 }
 0x7bb   :  { %3462 = vmatpush3.bf16.msra.mxu0 %v4167_v25 }
 0x7bc   :  { %3463 = vmatprep.subr.bf16.mxu0 %v3809_v0 }
 0x7bf   :  { %3465 = vmatpush3.bf16.msra.mxu0 %v4171_v28 }
 0x7c0   :  { %3466 = vmatprep.subr.bf16.mxu0 %v3809_v0 }
 0x7c3   :  { %3468 = vmatpush3.bf16.msra.mxu0 %v4175_v31 }
 0x7c4   :  { %3469 = vmatprep.subr.bf16.mxu0 %v3809_v0 }
 0x7c7   :  { %3471 = vmatpush3.bf16.msra.mxu0 %v4179_v34 }
 0x7c8   :  { %3472 = vmatprep.subr.bf16.mxu0 %v3809_v0 }
 0x7cb   :  { %3474 = vmatpush3.bf16.msra.mxu0 %v4184_v40 }
 0x7cc   :  { %3499 = vmatprep.subr.bf16.mxu0 %v3809_v0 }
 0x861   :  { %v1003_v42 = vpop.f32.mrb[10].mxu0 }
 0x862   :  { %v4211_v43 = vadd.f32 %v1964_v41, %v1003_v42  ;;  %v2729_v44 = vpop.f32.mrb[11].mxu0  ;;  %v1438_v41 = vld [vmem:[#allocation5 + $0x1e0] sm:$0xff]  ;;  %v1439_v42 = vld [vmem:[#allocation5 + $0x1e8] sm:$0xff] }
 0x863   :  { %v1455_v44 = vld [vmem:[#allocation7 + $0x1e0] sm:$0xff] }
 0x864   :  { %2763 = vmatmul.mubr.f32.vlgmr.msra.gmra.mrb[10].mxu1 %v4211_v43 }
 0x865   :  { %3429 = vmatpush3.bf16.msra.mxu1 %v4152_v15  ;;  %2832 = vmatprep.mubr.msk.f32.mxu1 %vm3810_vm0, %v3811_v1 }
 0x866   :  { %3430 = vmatprep.subr.bf16.mxu1 %v3809_v0 }
 0x869   :  { %3432 = vmatpush3.bf16.msra.mxu1 %v4157_v20 }
 0x86a   :  { %3433 = vmatprep.subr.bf16.mxu1 %v3809_v0 }
 0x86d   :  { %3435 = vmatpush3.bf16.msra.mxu1 %v4163_v22 }
 0x86e   :  { %3436 = vmatprep.subr.bf16.mxu1 %v3809_v0 }
 0x871   :  { %3438 = vmatpush3.bf16.msra.mxu1 %v4167_v25 }
 0x872   :  { %3439 = vmatprep.subr.bf16.mxu1 %v3809_v0 }
 0x875   :  { %3441 = vmatpush3.bf16.msra.mxu1 %v4171_v28 }
 0x876   :  { %3442 = vmatprep.subr.bf16.mxu1 %v3809_v0 }
 0x879   :  { %3444 = vmatpush3.bf16.msra.mxu1 %v4175_v31 }
 0x87a   :  { %3445 = vmatprep.subr.bf16.mxu1 %v3809_v0 }
 0x87d   :  { %3447 = vmatpush3.bf16.msra.mxu1 %v4179_v34 }
 0x87e   :  { %3448 = vmatprep.subr.bf16.mxu1 %v3809_v0 }
 0x881   :  { %3450 = vmatpush3.bf16.msra.mxu1 %v4184_v40  ;;  %v1185_v45 = vpop.f32.mrb[12].mxu0 }
 0x882   :  { %3475 = vmatprep.subr.bf16.mxu1 %v3809_v0  ;;  %v2799_v46 = vpop.f32.mrb[13].mxu0 }
 0x883   :  { %v1456_v46 = vld [vmem:[#allocation7 + $0x1e8] sm:$0xff] }
 0x937   :  { %v1115_v48 = vpop.f32.mrb[10].mxu1 }
 0x938   :  { %v4235_v49 = vadd.f32 %v1966_v47, %v1115_v48  ;;  %v2764_v50 = vpop.f32.mrb[11].mxu1  ;;  %v4295_v47 = vpack.c.bf16 %v1456_v46, %v1455_v44  ;;  %v1440_v48 = vld [vmem:[#allocation5 + $0x1f0] sm:$0xff] }
 0x939   :  { %v1441_v50 = vld [vmem:[#allocation5 + $0x1f8] sm:$0xff] }
 0x93a   :  { %v1189_v51 = vadd.f32 %v1185_v45, %v4235_v49  ;;  %v3518_v45 = vpack.c.bf16 %v1439_v42, %v1438_v41  ;;  %v1859_v41 = vld [vmem:[#allocation8 + $0xf8] sm:$0xff] }
 0x93c   :  { %3669 = vtanh.f32 %v1189_v51  ;;  %v1457_v51 = vld [vmem:[#allocation7 + $0x1f0] sm:$0xff] }
 0x946   :  { %v3670_v52 = vpop.eup %3669 }
 0x947   :  { %2833 = vmatmul.mubr.f32.vlgmr.msra.gmra.mrb[12].mxu1 %v3670_v52 }
 0x948   :  { %3477 = vmatpush3.bf16.msra.mxu1 %v4152_v15  ;;  %2902 = vmatprep.mubr.msk.f32.mxu1 %vm3810_vm0, %v3811_v1  ;;  %v1444_v15 = vld [vmem:[#allocation7 + $0x188] sm:$0xff] }
 0x949   :  { %3478 = vmatprep.subr.bf16.mxu1 %v3809_v0  ;;  %v4264_v17 = vpack.c.bf16 %v1444_v15, %v1443_v14  ;;  %v1845_v14 = vld [vmem:[#allocation8 + $0x88] sm:$0xff]  ;;  %v1846_v15 = vld [vmem:[#allocation8 + $0x90] sm:$0xff] }
 0x94c   :  { %3480 = vmatpush3.bf16.msra.mxu1 %v4157_v20  ;;  %v1445_v20 = vld [vmem:[#allocation7 + $0x190] sm:$0xff] }
 0x94d   :  { %3481 = vmatprep.subr.bf16.mxu1 %v3809_v0 }
 0x950   :  { %3483 = vmatpush3.bf16.msra.mxu1 %v4163_v22  ;;  %v4271_v22 = vpack.c.bf16 %v1446_v7, %v1445_v20  ;;  %v1849_v20 = vld [vmem:[#allocation8 + $0xa8] sm:$0xff] }
 0x951   :  { %3484 = vmatprep.subr.bf16.mxu1 %v3809_v0 }
 0x954   :  { %3486 = vmatpush3.bf16.msra.mxu1 %v4167_v25  ;;  %v4277_v25 = vpack.c.bf16 %v1448_v24, %v1447_v23 }
 0x955   :  { %3487 = vmatprep.subr.bf16.mxu1 %v3809_v0 }
 0x958   :  { %3489 = vmatpush3.bf16.msra.mxu1 %v4171_v28  ;;  %v4281_v28 = vpack.c.bf16 %v1450_v27, %v1449_v26 }
 0x959   :  { %3490 = vmatprep.subr.bf16.mxu1 %v3809_v0 }
 0x95c   :  { %3492 = vmatpush3.bf16.msra.mxu1 %v4175_v31  ;;  %v3512_v31 = vpack.c.bf16 %v1435_v30, %v1434_v29 }
 0x95d   :  { %3493 = vmatprep.subr.bf16.mxu1 %v3809_v0 }
 0x960   :  { %3495 = vmatpush3.bf16.msra.mxu1 %v4179_v34  ;;  %v4286_v34 = vpack.c.bf16 %v1452_v33, %v1451_v32  ;;  %v1853_v32 = vld [vmem:[#allocation8 + $0xc8] sm:$0xff] }
 0x961   :  { %3496 = vmatprep.subr.bf16.mxu1 %v3809_v0 }
 0x964   :  { %3498 = vmatpush3.bf16.msra.mxu1 %v4184_v40  ;;  %v4291_v40 = vpack.c.bf16 %v1454_v39, %v1453_v38  ;;  %v1857_v38 = vld [vmem:[#allocation8 + $0xe8] sm:$0xff] }
 0x965   :  { %3523 = vmatprep.subr.bf16.mxu1 %v3809_v0 }
 0xa1a   :  { %v1257_v54 = vpop.f32.mrb[12].mxu1 }
 0xa1b   :  { %v1262_v55 = vrot.slane %v1257_v54, 7  ;;  %v2834_v56 = vpop.f32.mrb[13].mxu1  ;;  %v3521_v54 = vpack.c.bf16 %v1441_v50, %v1440_v48 }
 0xa1d   :  { %v1264_v57 = vadd.f32 %v1262_v55, %v4235_v49 }
 0xa1f   :  { %3671 = vtanh.f32 %v1264_v57 }
 0xa29   :  { %v3672_v58 = vpop.eup %3671 }
 0xa2a   :  { %v1267_v59 = vrot.slane %v3672_v58, 1  ;;  %v1422_v18 = vsel %vm490_vm1, %v3670_v52, %v3672_v58  ;;  %v1458_v52 = vld [vmem:[#allocation7 + $0x1f8] sm:$0xff] }
 0xa2b   :  { %v4300_v55 = vpack.c.bf16 %v1458_v52, %v1457_v51  ;;  %v1970_v51 = vld [vmem:[%s4405_s5 + $0x1] ss:$0 sm:$0xff] }
 0xa2c   :  { %2868 = vmatmul.mubr.f32.vlgmr.msra.gmra.mrb[14].mxu0 %v1267_v59 }
 0xa2d   :  { %2937 = vmatprep.mubr.msk.f32.mxu0 %vm3810_vm0, %v3811_v1  ;;  %3501 = vmatpush3.bf16.msra.mxu0 %v3500_v62 }
 0xa2e   :  { %3502 = vmatprep.subr.bf16.mxu0 %v3809_v0 }
 0xa31   :  { %3504 = vmatpush3.bf16.msra.mxu0 %v3503_v3 }
 0xa32   :  { %3505 = vmatprep.subr.bf16.mxu0 %v3809_v0 }
 0xa35   :  { %3507 = vmatpush3.bf16.msra.mxu0 %v3506_v5 }
 0xa36   :  { %3508 = vmatprep.subr.bf16.mxu0 %v3809_v0 }
 0xa39   :  { %3510 = vmatpush3.bf16.msra.mxu0 %v3509_v9 }
 0xa3a   :  { %3511 = vmatprep.subr.bf16.mxu0 %v3809_v0 }
 0xa3d   :  { %3513 = vmatpush3.bf16.msra.mxu0 %v3512_v31  ;;  %v1852_v31 = vld [vmem:[#allocation8 + $0xc0] sm:$0xff] }
 0xa3e   :  { %3514 = vmatprep.subr.bf16.mxu0 %v3809_v0  ;;  %v3632_v33 = vpack.c.bf16 %v1853_v32, %v1852_v31 }
 0xa41   :  { %3516 = vmatpush3.bf16.msra.mxu0 %v3515_v37  ;;  %v1856_v37 = vld [vmem:[#allocation8 + $0xe0] sm:$0xff] }
 0xa42   :  { %3517 = vmatprep.subr.bf16.mxu0 %v3809_v0  ;;  %v3638_v39 = vpack.c.bf16 %v1857_v38, %v1856_v37 }
 0xa45   :  { %3519 = vmatpush3.bf16.msra.mxu0 %v3518_v45 }
 0xa46   :  { %3520 = vmatprep.subr.bf16.mxu0 %v3809_v0 }
 0xa49   :  { %3522 = vmatpush3.bf16.msra.mxu0 %v3521_v54 }
 0xa4a   :  { %3547 = vmatprep.subr.bf16.mxu0 %v3809_v0 }
 0xaff   :  { %v1335_v10 = vpop.f32.mrb[14].mxu0 }
 0xb00   :  { %v1340_v11 = vrot.slane %v1335_v10, 6  ;;  %v2869_v12 = vpop.f32.mrb[15].mxu0 }
 0xb02   :  { %v1342_v13 = vadd.f32 %v1340_v11, %v4235_v49 }
 0xb04   :  { %3673 = vtanh.f32 %v1342_v13  ;;  %v1844_v13 = vld [vmem:[#allocation8 + $0x80] sm:$0xff] }
 0xb0e   :  { %v3674_v16 = vpop.eup %3673 }
 0xb0f   :  { %v1345_v19 = vrot.slane %v3674_v16, 2  ;;  %v4268_v21 = vsel %vm492_vm2, %v1422_v18, %v3674_v16  ;;  %v3620_v16 = vpack.c.bf16 %v1845_v14, %v1844_v13 }
 0xb11   :  { %2903 = vmatmul.mubr.f32.vlgmr.msra.gmra.mrb[14].mxu1 %v1345_v19  ;;  %v1848_v19 = vld [vmem:[#allocation8 + $0xa0] sm:$0xff] }
 0xb12   :  { %3525 = vmatpush3.bf16.msra.mxu1 %v4264_v17  ;;  %2972 = vmatprep.mubr.msk.f32.mxu1 %vm3810_vm0, %v3811_v1  ;;  %v3626_v7 = vpack.c.bf16 %v1849_v20, %v1848_v19 }
 0xb13   :  { %3526 = vmatprep.subr.bf16.mxu1 %v3809_v0 }
 0xb16   :  { %3528 = vmatpush3.bf16.msra.mxu1 %v4271_v22 }
 0xb17   :  { %3529 = vmatprep.subr.bf16.mxu1 %v3809_v0 }
 0xb1a   :  { %3531 = vmatpush3.bf16.msra.mxu1 %v4277_v25 }
 0xb1b   :  { %3532 = vmatprep.subr.bf16.mxu1 %v3809_v0 }
 0xb1e   :  { %3534 = vmatpush3.bf16.msra.mxu1 %v4281_v28 }
 0xb1f   :  { %3535 = vmatprep.subr.bf16.mxu1 %v3809_v0 }
 0xb22   :  { %3537 = vmatpush3.bf16.msra.mxu1 %v4286_v34 }
 0xb23   :  { %3538 = vmatprep.subr.bf16.mxu1 %v3809_v0 }
 0xb26   :  { %3540 = vmatpush3.bf16.msra.mxu1 %v4291_v40 }
 0xb27   :  { %3541 = vmatprep.subr.bf16.mxu1 %v3809_v0 }
 0xb2a   :  { %3543 = vmatpush3.bf16.msra.mxu1 %v4295_v47 }
 0xb2b   :  { %3544 = vmatprep.subr.bf16.mxu1 %v3809_v0 }
 0xb2e   :  { %3546 = vmatpush3.bf16.msra.mxu1 %v4300_v55 }
 0xb2f   :  { %3571 = vmatprep.subr.bf16.mxu1 %v3809_v0 }
 0xb31   :  { %2973 = vmatmul.mubr.f32.vlgmr.msra.gmra.mrb[16].mxu1 %v3811_v1 }
 0xb32   :  { %3573 = vmatpush3.bf16.msra.mxu1 %v4264_v17  ;;  %3042 = vmatprep.mubr.msk.f32.mxu1 %vm3810_vm0, %v3811_v1 }
 0xb33   :  { %3574 = vmatprep.subr.bf16.mxu1 %v3809_v0 }
 0xb36   :  { %3576 = vmatpush3.bf16.msra.mxu1 %v4271_v22 }
 0xb37   :  { %3577 = vmatprep.subr.bf16.mxu1 %v3809_v0 }
 0xb3a   :  { %3579 = vmatpush3.bf16.msra.mxu1 %v4277_v25 }
 0xb3b   :  { %3580 = vmatprep.subr.bf16.mxu1 %v3809_v0 }
 0xb3e   :  { %3582 = vmatpush3.bf16.msra.mxu1 %v4281_v28 }
 0xb3f   :  { %3583 = vmatprep.subr.bf16.mxu1 %v3809_v0 }
 0xb42   :  { %3585 = vmatpush3.bf16.msra.mxu1 %v4286_v34 }
 0xb43   :  { %3586 = vmatprep.subr.bf16.mxu1 %v3809_v0 }
 0xb46   :  { %3588 = vmatpush3.bf16.msra.mxu1 %v4291_v40 }
 0xb47   :  { %3589 = vmatprep.subr.bf16.mxu1 %v3809_v0 }
 0xb4a   :  { %3591 = vmatpush3.bf16.msra.mxu1 %v4295_v47 }
 0xb4b   :  { %3592 = vmatprep.subr.bf16.mxu1 %v3809_v0 }
 0xb4e   :  { %3594 = vmatpush3.bf16.msra.mxu1 %v4300_v55 }
 0xb4f   :  { %3619 = vmatprep.subr.bf16.mxu1 %v3809_v0 }
 0xbe4   :  { %v1413_v56 = vpop.f32.mrb[14].mxu1 }
 0xbe5   :  { %v1418_v57 = vrot.slane %v1413_v56, 5  ;;  %v2904_v58 = vpop.f32.mrb[15].mxu1 }
 0xbe7   :  { %v1420_v59 = vadd.f32 %v1418_v57, %v4235_v49 }
 0xbe9   :  { %3675 = vtanh.f32 %v1420_v59 }
 0xbf3   :  { %v3676_v60 = vpop.eup %3675 }
 0xbf4   :  { %v1424_v61 = vsel %vm494_vm3, %v4268_v21, %v3676_v60  ;;  %v1850_v21 = vld [vmem:[#allocation8 + $0xb0] sm:$0xff] }
 0xbf5   :  { %2938 = vmatmul.mubr.f32.vlgmr.msra.gmra.mrb[16].mxu0 %v1424_v61 }
 0xbf6   :  { %3549 = vmatpush3.bf16.msra.mxu0 %v4264_v17  ;;  %3007 = vmatprep.mubr.msk.f32.mxu0 %vm3810_vm0, %v3811_v1 }
 0xbf7   :  { %3550 = vmatprep.subr.bf16.mxu0 %v3809_v0 }
 0xbfa   :  { %3552 = vmatpush3.bf16.msra.mxu0 %v4271_v22 }
 0xbfb   :  { %3553 = vmatprep.subr.bf16.mxu0 %v3809_v0 }
 0xbfe   :  { %3555 = vmatpush3.bf16.msra.mxu0 %v4277_v25 }
 0xbff   :  { %3556 = vmatprep.subr.bf16.mxu0 %v3809_v0 }
 0xc02   :  { %3558 = vmatpush3.bf16.msra.mxu0 %v4281_v28 }
 0xc03   :  { %3559 = vmatprep.subr.bf16.mxu0 %v3809_v0 }
 0xc04   :  { %v1603_v49 = vpop.f32.mrb[16].mxu1 }
 0xc05   :  { %v2974_v62 = vpop.f32.mrb[17].mxu1 }
 0xc06   :  { %3561 = vmatpush3.bf16.msra.mxu0 %v4286_v34 }
 0xc07   :  { %3562 = vmatprep.subr.bf16.mxu0 %v3809_v0 }
 0xc0a   :  { %3564 = vmatpush3.bf16.msra.mxu0 %v4291_v40 }
 0xc0b   :  { %3565 = vmatprep.subr.bf16.mxu0 %v3809_v0 }
 0xc0e   :  { %3567 = vmatpush3.bf16.msra.mxu0 %v4295_v47 }
 0xc0f   :  { %3568 = vmatprep.subr.bf16.mxu0 %v3809_v0 }
 0xc12   :  { %3570 = vmatpush3.bf16.msra.mxu0 %v4300_v55 }
 0xc13   :  { %3595 = vmatprep.subr.bf16.mxu0 %v3809_v0 }
 0xcc8   :  { %v1533_v2 = vpop.f32.mrb[16].mxu0 }
 0xcc9   :  { %v4349_v3 = vadd.f32 %v1968_v63, %v1533_v2  ;;  %v2939_v53 = vpop.f32.mrb[17].mxu0 }
 0xccb   :  { %v1607_v4 = vadd.f32 %v1603_v49, %v4349_v3 }
 0xccd   :  { %3677 = vtanh.f32 %v1607_v4 }
 0xcd7   :  { %v3678_v5 = vpop.eup %3677 }
 0xcd8   :  { %3008 = vmatmul.mubr.f32.vlgmr.msra.gmra.mrb[18].mxu0 %v3678_v5 }
 0xcd9   :  { %3597 = vmatpush3.bf16.msra.mxu0 %v4264_v17  ;;  %3077 = vmatprep.mubr.msk.f32.mxu0 %vm3810_vm0, %v3811_v1  ;;  %v1847_v17 = vld [vmem:[#allocation8 + $0x98] sm:$0xff] }
 0xcda   :  { %3598 = vmatprep.subr.bf16.mxu0 %v3809_v0  ;;  %v3623_v18 = vpack.c.bf16 %v1847_v17, %v1846_v15 }
 0xcdd   :  { %3600 = vmatpush3.bf16.msra.mxu0 %v4271_v22  ;;  %v1851_v22 = vld [vmem:[#allocation8 + $0xb8] sm:$0xff] }
 0xcde   :  { %3601 = vmatprep.subr.bf16.mxu0 %v3809_v0  ;;  %v3629_v23 = vpack.c.bf16 %v1851_v22, %v1850_v21 }
 0xce1   :  { %3603 = vmatpush3.bf16.msra.mxu0 %v4277_v25 }
 0xce2   :  { %3604 = vmatprep.subr.bf16.mxu0 %v3809_v0 }
 0xce5   :  { %3606 = vmatpush3.bf16.msra.mxu0 %v4281_v28 }
 0xce6   :  { %3607 = vmatprep.subr.bf16.mxu0 %v3809_v0 }
 0xce9   :  { %3609 = vmatpush3.bf16.msra.mxu0 %v4286_v34  ;;  %v1854_v34 = vld [vmem:[#allocation8 + $0xd0] sm:$0xff] }
 0xcea   :  { %3610 = vmatprep.subr.bf16.mxu0 %v3809_v0  ;;  %v3635_v36 = vpack.c.bf16 %v1855_v35, %v1854_v34 }
 0xced   :  { %3612 = vmatpush3.bf16.msra.mxu0 %v4291_v40  ;;  %v1858_v40 = vld [vmem:[#allocation8 + $0xf0] sm:$0xff] }
 0xcee   :  { %3613 = vmatprep.subr.bf16.mxu0 %v3809_v0  ;;  %v3641_v42 = vpack.c.bf16 %v1859_v41, %v1858_v40 }
 0xcf1   :  { %3615 = vmatpush3.bf16.msra.mxu0 %v4295_v47 }
 0xcf2   :  { %3616 = vmatprep.subr.bf16.mxu0 %v3809_v0 }
 0xcf5   :  { %3618 = vmatpush3.bf16.msra.mxu0 %v4300_v55 }
 0xdab   :  { %v1675_v6 = vpop.f32.mrb[18].mxu0 }
 0xdac   :  { %v1680_v8 = vrot.slane %v1675_v6, 7  ;;  %v3009_v9 = vpop.f32.mrb[19].mxu0 }
 0xdae   :  { %v1682_v10 = vadd.f32 %v1680_v8, %v4349_v3 }
 0xdb0   :  { %3679 = vtanh.f32 %v1682_v10 }
 0xdba   :  { %v3680_v11 = vpop.eup %3679 }
 0xdbb   :  { %v1685_v12 = vrot.slane %v3680_v11, 1  ;;  %v1840_v28 = vsel %vm490_vm1, %v3678_v5, %v3680_v11 }
 0xdbd   :  { %3043 = vmatmul.mubr.f32.vlgmr.msra.gmra.mrb[18].mxu1 %v1685_v12 }
 0xdbe   :  { %3112 = vmatprep.mubr.msk.f32.mxu1 %vm3810_vm0, %v3811_v1  ;;  %3621 = vmatpush3.bf16.msra.mxu1 %v3620_v16 }
 0xdbf   :  { %3622 = vmatprep.subr.bf16.mxu1 %v3809_v0 }
 0xdc2   :  { %3624 = vmatpush3.bf16.msra.mxu1 %v3623_v18 }
 0xdc3   :  { %3625 = vmatprep.subr.bf16.mxu1 %v3809_v0 }
 0xdc6   :  { %3627 = vmatpush3.bf16.msra.mxu1 %v3626_v7 }
 0xdc7   :  { %3628 = vmatprep.subr.bf16.mxu1 %v3809_v0 }
 0xdca   :  { %3630 = vmatpush3.bf16.msra.mxu1 %v3629_v23 }
 0xdcb   :  { %3631 = vmatprep.subr.bf16.mxu1 %v3809_v0 }
 0xdce   :  { %3633 = vmatpush3.bf16.msra.mxu1 %v3632_v33 }
 0xdcf   :  { %3634 = vmatprep.subr.bf16.mxu1 %v3809_v0 }
 0xdd2   :  { %3636 = vmatpush3.bf16.msra.mxu1 %v3635_v36 }
 0xdd3   :  { %3637 = vmatprep.subr.bf16.mxu1 %v3809_v0 }
 0xdd6   :  { %3639 = vmatpush3.bf16.msra.mxu1 %v3638_v39 }
 0xdd7   :  { %3640 = vmatprep.subr.bf16.mxu1 %v3809_v0 }
 0xdda   :  { %3642 = vmatpush3.bf16.msra.mxu1 %v3641_v42 }
 0xe90   :  { %v1753_v1 = vpop.f32.mrb[18].mxu1 }
 0xe91   :  { %v1758_v24 = vrot.slane %v1753_v1, 6  ;;  %v3044_v25 = vpop.f32.mrb[19].mxu1 }
 0xe93   :  { %v1760_v26 = vadd.f32 %v1758_v24, %v4349_v3 }
 0xe95   :  { %3681 = vtanh.f32 %v1760_v26 }
 0xe9f   :  { %v3682_v27 = vpop.eup %3681 }
 0xea0   :  { %v1763_v29 = vrot.slane %v3682_v27, 2  ;;  %v1841_v30 = vsel %vm492_vm2, %v1840_v28, %v3682_v27 }
 0xea2   :  { %3078 = vmatmul.mubr.f32.vlgmr.msra.gmra.mrb[20].mxu0 %v1763_v29 }
 0xf75   :  { %v1831_v44 = vpop.f32.mrb[20].mxu0 }
 0xf76   :  { %v1836_v45 = vrot.slane %v1831_v44, 5  ;;  %v3079_v46 = vpop.f32.mrb[21].mxu0 }
 0xf78   :  { %v1838_v47 = vadd.f32 %v1836_v45, %v4349_v3 }
 0xf7a   :  { %3683 = vtanh.f32 %v1838_v47 }
 0xf84   :  { %v3684_v48 = vpop.eup %3683 }
 0xf85   :  { %v1842_v50 = vsel %vm494_vm3, %v1841_v30, %v3684_v48 }
 0xf86   :  { %3113 = vmatmul.mubr.f32.vlgmr.msra.gmra.mrb[20].mxu1 %v1842_v50 }
0x1059   :  { %v1934_v52 = vpop.f32.mrb[20].mxu1 }
0x105a   :  { %v1935_v54 = vadd.f32 %v1970_v51, %v1934_v52  ;;  %v3114_v55 = vpop.f32.mrb[21].mxu1 }
0x105c   :  { %v1939_v0 = vrot.slane %v1935_v54, 4 }
0x105e   :  { %v1942_v56 = vsel %vm1941_vm4, %v4211_v43, %v1939_v0 }
0x105f   :  { %1943 = vst [vmem:[#allocation10] sm:$0xff] %v1942_v56 }
0x1060   :  { %3784 = shalt.err (!%p3781_p8)
}
0x1061   :  { %s3785_s10 = scalar_lea.hbm %s4406_s6, 128 }
0x1062   :  { %p3786_p9 = scmp.ne.s32.totalorder %s4406_s6, %s3785_s10  ;;  %p3789_p10 = scmp.lt.u32.totalorder %s3785_s10, %s4406_s6 }
0x1064   :  { %p3791_p11 = pnand %p3789_p10, %p3786_p9 }
0x1066   :  { %3794 = shalt.err (!%p3791_p11)
}
0x1067   :  { %1953 = dma.vmem_to_hbm [thread:$0]  %s1951_s30, 128, %s4406_s6, [#allocation4]  }
0x1068   :  { %3801 = dma.done.wait [#allocation4], 128  }
0x1069   :  { %3802 = vsyncadd [#allocation4], 4294967168 }
0x106a   :  { %1957 = vsyncpa [#allocation3], 1 }
0x106b   :  { %1958 = vsyncpa [#allocation6], 1 }
0x106c   :  { %1959 = vsyncpa [#allocation9], 1 }
0x106d   :  { %1960 = vsyncpa [#allocation4], 1 }

</bundles_post_ra>
